<compile_context>
chip_gen: v5e
topology: v5e:2x2
jax: 0.10.0
libtpu: 0.0.40
codegen_flags: <defaults>
</compile_context>

<pallas_src>
import math
import functools

import jax
import jax.numpy as jnp
from jax.experimental import pallas as pl
from jax.experimental.pallas import tpu as pltpu


# ----------------------------------------------------------------------------
# Kernels
# ----------------------------------------------------------------------------

def embed_pos_kernel(tok_ref, table_ref, pe_ref, o_ref, *, S, B, scale):
    """Embedding gather * sqrt(d_model) + positional encoding.

    tok_ref:   SMEM [B*S] int32, row order n = b*S + s
    table_ref: VMEM [ntoken, D] f32
    pe_ref:    VMEM [S, D] f32
    o_ref:     VMEM [B*S, D] f32
    """
    for n in range(B * S):                       # tiny static unroll (16 rows)
        t = tok_ref[n]                           # scalar token id from SMEM
        s = n % S
        o_ref[pl.ds(n, 1), :] = (table_ref[pl.ds(t, 1), :] * scale
                                 + pe_ref[pl.ds(s, 1), :])


def _layer_norm(x, w, b, eps=1e-5):
    mu = jnp.mean(x, axis=-1, keepdims=True)
    var = jnp.mean((x - mu) ** 2, axis=-1, keepdims=True)
    return (x - mu) * jax.lax.rsqrt(var + eps) * w + b


def fused_encoder_kernel(x_ref, mask_ref,
                         in_w_ref, in_b_ref, out_w_ref, out_b_ref,
                         ln1_w_ref, ln1_b_ref,
                         w1_ref, b1_ref, w2_ref, b2_ref,
                         ln2_w_ref, ln2_b_ref,
                         o_ref, x_scr, *, S, B, D, H):
    """All nlayers post-norm TransformerEncoderLayers; grid axis 0 = layer index.

    Activations live in x_scr (VMEM, resident across the whole grid); each grid step
    applies one layer. Row order of activations is n = b*S + s. Weights are
    pre-transposed bf16 (y = x @ W_t), biases / LN params f32.
    """
    l = pl.program_id(0)
    hd = D // H
    scale = 1.0 / math.sqrt(hd)

    @pl.when(l == 0)
    def _():
        x_scr[...] = x_ref[...]

    x = x_scr[...]                               # [B*S, D] f32 carry
    x16 = x.astype(jnp.bfloat16)

    # ---- multi-head self-attention (single QKV matmul, batched einsums) ----
    qkv = jnp.dot(x16, in_w_ref[...], preferred_element_type=jnp.float32) + in_b_ref[...]
    q = qkv[:, 0 * D:1 * D].reshape(B, S, D).astype(jnp.bfloat16)
    k = qkv[:, 1 * D:2 * D].reshape(B, S, D).astype(jnp.bfloat16)
    v = qkv[:, 2 * D:3 * D].reshape(B, S, D).astype(jnp.bfloat16)
    mask = mask_ref[...][None, :, :]             # [1, S, S] additive float mask

    ctx = []
    for h in range(H):                           # static unroll over heads; batch dim = B
        sl = slice(h * hd, (h + 1) * hd)
        s_h = jnp.einsum('bsd,btd->bst', q[:, :, sl], k[:, :, sl],
                         preferred_element_type=jnp.float32) * scale + mask
        m = jnp.max(s_h, axis=-1, keepdims=True)
        e = jnp.exp(s_h - m)                     # f32 softmax
        p = e * pl.reciprocal(jnp.sum(e, axis=-1, keepdims=True), approx=True)
        ctx.append(jnp.einsum('bst,btd->bsd', p.astype(jnp.bfloat16), v[:, :, sl],
                              preferred_element_type=jnp.float32))
    attn = jnp.concatenate(ctx, axis=-1).reshape(B * S, D).astype(jnp.bfloat16)
    attn = jnp.dot(attn, out_w_ref[...], preferred_element_type=jnp.float32) + out_b_ref[...]

    # residual + layer norm 1 (post-norm)
    y = _layer_norm(x + attn, ln1_w_ref[...], ln1_b_ref[...])

    # ---- feed-forward (ReLU, PyTorch default) ----
    ff = jnp.dot(y.astype(jnp.bfloat16), w1_ref[...],
                 preferred_element_type=jnp.float32) + b1_ref[...]
    ff = jnp.maximum(ff, 0.0)
    ff = jnp.dot(ff.astype(jnp.bfloat16), w2_ref[...],
                 preferred_element_type=jnp.float32) + b2_ref[...]

    # residual + layer norm 2
    out = _layer_norm(y + ff, ln2_w_ref[...], ln2_b_ref[...])
    x_scr[...] = out                             # carry to next layer
    o_ref[...] = out                             # resident output block


def decoder_kernel(x_ref, w_ref, b_ref, o_ref):
    """Final linear decoder with lane-dense (128-padded) vocab output."""
    o_ref[...] = (jnp.dot(x_ref[...].astype(jnp.bfloat16), w_ref[...],
                          preferred_element_type=jnp.float32) + b_ref[...])


# ----------------------------------------------------------------------------
# Parameter construction (deterministic, mirrors the PyTorch __init__ shapes)
# ----------------------------------------------------------------------------

def make_params(key, *, ntoken, d_model, nhead, d_hid, nlayers):
    initrange = 0.1
    D = d_model
    keys = jax.random.split(key, 2 + 6 * nlayers)
    ki = iter(keys)

    emb_table = jax.random.uniform(next(ki), (ntoken, D),
                                   minval=-initrange, maxval=initrange,
                                   dtype=jnp.float32)
    dec_w = jax.random.uniform(next(ki), (ntoken, D),
                               minval=-initrange, maxval=initrange,
                               dtype=jnp.float32)

    ntoken_pad = ((ntoken + 127) // 128) * 128          # lane-dense decoder output
    dec_w_t = (jnp.zeros((D, ntoken_pad), jnp.float32)
               .at[:, :ntoken].set(dec_w.T)).astype(jnp.bfloat16)
    dec_b = jnp.zeros((1, ntoken_pad), jnp.float32)

    s = 0.05
    layers = []
    for _ in range(nlayers):
        in_w = jax.random.normal(next(ki), (3 * D, D), jnp.float32) * s
        in_b = jax.random.normal(next(ki), (1, 3 * D), jnp.float32) * s
        out_w = jax.random.normal(next(ki), (D, D), jnp.float32) * s
        w1 = jax.random.normal(next(ki), (d_hid, D), jnp.float32) * s
        b1 = jax.random.normal(next(ki), (1, d_hid), jnp.float32) * s
        w2 = jax.random.normal(next(ki), (D, d_hid), jnp.float32) * s
        layers.append(dict(
            in_w_t=in_w.T.astype(jnp.bfloat16),          # [D, 3D]
            in_b=in_b,                                    # [1, 3D]
            out_w_t=out_w.T.astype(jnp.bfloat16),         # [D, D]
            out_b=jnp.zeros((1, D), jnp.float32),
            ln1_w=jnp.ones((1, D), jnp.float32),
            ln1_b=jnp.zeros((1, D), jnp.float32),
            w1_t=w1.T.astype(jnp.bfloat16),               # [D, d_hid]
            b1=b1,                                        # [1, d_hid]
            w2_t=w2.T.astype(jnp.bfloat16),               # [d_hid, D]
            b2=jnp.zeros((1, D), jnp.float32),
            ln2_w=jnp.ones((1, D), jnp.float32),
            ln2_b=jnp.zeros((1, D), jnp.float32),
        ))
    stacked = {k: jnp.stack([lyr[k] for lyr in layers], axis=0) for k in layers[0]}

    return {"emb_table": emb_table, "dec_w_t": dec_w_t, "dec_b": dec_b,
            "layers": stacked}


def positional_encoding(seq_len, d_model):
    """pe[:seq_len, 0, :] from the PyTorch PositionalEncoding buffer."""
    position = jnp.arange(seq_len, dtype=jnp.float32)[:, None]            # [S, 1]
    div_term = jnp.exp(jnp.arange(0, d_model, 2, dtype=jnp.float32)
                       * (-math.log(10000.0) / d_model))                  # [D/2]
    pe = jnp.zeros((seq_len, d_model), jnp.float32)
    pe = pe.at[:, 0::2].set(jnp.sin(position * div_term))
    pe = pe.at[:, 1::2].set(jnp.cos(position * div_term))
    return pe                                                             # [S, D]


# ----------------------------------------------------------------------------
# Forward pass wrapper
# ----------------------------------------------------------------------------

def transformer_forward(src, src_mask, params, *, d_model, nhead, d_hid, ntoken, nlayers):
    """src: [seq_len, batch] int32; src_mask: [seq_len, seq_len] float additive mask.

    Returns [seq_len, batch, ntoken] float32 logits.
    """
    S, B = src.shape
    N = B * S
    D = d_model
    assert D % nhead == 0

    # internal row order is n = b*S + s (batch-major) -> no in-kernel transposes needed
    tok = jnp.transpose(src).reshape(N).astype(jnp.int32)
    pe = positional_encoding(S, D)                                        # [S, D]

    # --- embedding gather * sqrt(d_model) + positional encoding -------------
    x = pl.pallas_call(
        functools.partial(embed_pos_kernel, S=S, B=B, scale=math.sqrt(D)),
        out_shape=jax.ShapeDtypeStruct((N, D), jnp.float32),
        in_specs=[pl.BlockSpec(memory_space=pltpu.MemorySpace.SMEM),
                  pl.BlockSpec(memory_space=pltpu.MemorySpace.VMEM),
                  pl.BlockSpec(memory_space=pltpu.MemorySpace.VMEM)],
        out_specs=pl.BlockSpec(memory_space=pltpu.MemorySpace.VMEM),
    )(tok, params["emb_table"], pe)

    # --- fused nlayers encoder (single pallas_call, grid over layers) -------
    lw = params["layers"]

    def resident(shape):                       # same block every layer -> stays in VMEM
        return pl.BlockSpec(shape, lambda l: (0,) * len(shape))

    def per_layer(shape):                      # one slice of the stacked weights per step
        return pl.BlockSpec((None,) + shape, lambda l: (l,) + (0,) * len(shape))

    x = pl.pallas_call(
        functools.partial(fused_encoder_kernel, S=S, B=B, D=D, H=nhead),
        out_shape=jax.ShapeDtypeStruct((N, D), jnp.float32),
        grid=(nlayers,),
        in_specs=[
            resident((N, D)),                  # x (layer-0 input)
            resident((S, S)),                  # additive attention mask
            per_layer((D, 3 * D)),             # in_w_t  (bf16)
            per_layer((1, 3 * D)),             # in_b
            per_layer((D, D)),                 # out_w_t (bf16)
            per_layer((1, D)),                 # out_b
            per_layer((1, D)),                 # ln1_w
            per_layer((1, D)),                 # ln1_b
            per_layer((D, d_hid)),             # w1_t    (bf16)
            per_layer((1, d_hid)),             # b1
            per_layer((d_hid, D)),             # w2_t    (bf16)
            per_layer((1, D)),                 # b2
            per_layer((1, D)),                 # ln2_w
            per_layer((1, D)),                 # ln2_b
        ],
        out_specs=resident((N, D)),
        scratch_shapes=[pltpu.VMEM((N, D), jnp.float32)],   # resident activation carry
        compiler_params=pltpu.CompilerParams(
            dimension_semantics=("arbitrary",)),             # layers are sequential
    )(x, src_mask,
      lw["in_w_t"], lw["in_b"], lw["out_w_t"], lw["out_b"],
      lw["ln1_w"], lw["ln1_b"],
      lw["w1_t"], lw["b1"], lw["w2_t"], lw["b2"],
      lw["ln2_w"], lw["ln2_b"])

    # --- final linear decoder (lane-dense, 128-padded vocab) -----------------
    ntoken_pad = params["dec_w_t"].shape[1]
    logits = pl.pallas_call(
        decoder_kernel,
        out_shape=jax.ShapeDtypeStruct((N, ntoken_pad), jnp.float32),
        in_specs=[pl.BlockSpec(memory_space=pltpu.MemorySpace.VMEM)] * 3,
        out_specs=pl.BlockSpec(memory_space=pltpu.MemorySpace.VMEM),
    )(x, params["dec_w_t"], params["dec_b"])

    # restore PyTorch output order [seq_len, batch, ntoken]
    return logits[:, :ntoken].reshape(B, S, ntoken).transpose(1, 0, 2)


# ----------------------------------------------------------------------------
# Main
# ----------------------------------------------------------------------------

if __name__ == "__main__":
    # Small, forward-consistent shapes.
    ntoken, d_model, nhead, d_hid, nlayers = 40, 32, 4, 64, 2
    seq_len, batch = 8, 2

    key = jax.random.PRNGKey(0)
    k_param, k_src = jax.random.split(key)

    params = make_params(k_param, ntoken=ntoken, d_model=d_model,
                         nhead=nhead, d_hid=d_hid, nlayers=nlayers)

    # src: [seq_len, batch] token ids; src_mask: causal additive float mask
    src = jax.random.randint(k_src, (seq_len, batch), 0, ntoken, dtype=jnp.int32)
    src_mask = jnp.where(
        jnp.triu(jnp.ones((seq_len, seq_len), jnp.bool_), k=1),
        jnp.float32(-1e9), jnp.float32(0.0))   # -1e9 stands in for -inf

    fwd = jax.jit(functools.partial(transformer_forward,
                                    d_model=d_model, nhead=nhead,
                                    d_hid=d_hid, ntoken=ntoken, nlayers=nlayers))
    out = fwd(src, src_mask, params)
    out = jax.block_until_ready(out)

    assert out.shape == (seq_len, batch, ntoken), out.shape
    assert bool(jnp.all(jnp.isfinite(out)))
    print("KERNEL_OK")
</pallas_src>

<mosaic_0001>
module attributes {stable_mosaic.version = 11 : i64} {
  func.func @embed_pos_kernel(%arg0: memref<16xi32, #tpu.memory_space<smem>>, %arg1: memref<40x32xf32, #tpu.memory_space<vmem>>, %arg2: memref<8x32xf32, #tpu.memory_space<vmem>>, %arg3: memref<16x32xf32, #tpu.memory_space<vmem>>) attributes {dimension_semantics = [], scalar_prefetch = 0 : i64, scratch_operands = 0 : i64, tpu.core_type = #tpu.core_type<tc>} {
    %c0 = arith.constant 0 : index
    %0 = memref.load %arg0[%c0] : memref<16xi32, #tpu.memory_space<smem>>
    %1 = arith.index_cast %0 : i32 to index
    %c0_0 = arith.constant 0 : index
    %2 = vector.load %arg1[%1, %c0_0] : memref<40x32xf32, #tpu.memory_space<vmem>>, vector<1x32xf32>
    %cst = arith.constant 5.65685415 : f32
    %3 = vector.broadcast %cst : f32 to vector<1x32xf32>
    %4 = arith.mulf %2, %3 : vector<1x32xf32>
    %c0_1 = arith.constant 0 : index
    %c0_2 = arith.constant 0 : index
    %5 = vector.load %arg2[%c0_1, %c0_2] : memref<8x32xf32, #tpu.memory_space<vmem>>, vector<1x32xf32>
    %6 = arith.addf %4, %5 : vector<1x32xf32>
    %c0_3 = arith.constant 0 : index
    %c0_4 = arith.constant 0 : index
    %7 = vector.load %arg3[%c0_3, %c0_4] : memref<16x32xf32, #tpu.memory_space<vmem>>, vector<1x32xf32>
    tpu.vector_store %arg3[%c0_3, %c0_4], %6 {strides = array<i32>} : memref<16x32xf32, #tpu.memory_space<vmem>>, vector<1x32xf32>,
    %c1 = arith.constant 1 : index
    %8 = memref.load %arg0[%c1] : memref<16xi32, #tpu.memory_space<smem>>
    %9 = arith.index_cast %8 : i32 to index
    %c0_5 = arith.constant 0 : index
    %10 = vector.load %arg1[%9, %c0_5] : memref<40x32xf32, #tpu.memory_space<vmem>>, vector<1x32xf32>
    %cst_6 = arith.constant 5.65685415 : f32
    %11 = vector.broadcast %cst_6 : f32 to vector<1x32xf32>
    %12 = arith.mulf %10, %11 : vector<1x32xf32>
    %c1_7 = arith.constant 1 : index
    %c0_8 = arith.constant 0 : index
    %13 = vector.load %arg2[%c1_7, %c0_8] : memref<8x32xf32, #tpu.memory_space<vmem>>, vector<1x32xf32>
    %14 = arith.addf %12, %13 : vector<1x32xf32>
    %c1_9 = arith.constant 1 : index
    %c0_10 = arith.constant 0 : index
    %15 = vector.load %arg3[%c1_9, %c0_10] : memref<16x32xf32, #tpu.memory_space<vmem>>, vector<1x32xf32>
    tpu.vector_store %arg3[%c1_9, %c0_10], %14 {strides = array<i32>} : memref<16x32xf32, #tpu.memory_space<vmem>>, vector<1x32xf32>,
    %c2 = arith.constant 2 : index
    %16 = memref.load %arg0[%c2] : memref<16xi32, #tpu.memory_space<smem>>
    %17 = arith.index_cast %16 : i32 to index
    %c0_11 = arith.constant 0 : index
    %18 = vector.load %arg1[%17, %c0_11] : memref<40x32xf32, #tpu.memory_space<vmem>>, vector<1x32xf32>
    %cst_12 = arith.constant 5.65685415 : f32
    %19 = vector.broadcast %cst_12 : f32 to vector<1x32xf32>
    %20 = arith.mulf %18, %19 : vector<1x32xf32>
    %c2_13 = arith.constant 2 : index
    %c0_14 = arith.constant 0 : index
    %21 = vector.load %arg2[%c2_13, %c0_14] : memref<8x32xf32, #tpu.memory_space<vmem>>, vector<1x32xf32>
    %22 = arith.addf %20, %21 : vector<1x32xf32>
    %c2_15 = arith.constant 2 : index
    %c0_16 = arith.constant 0 : index
    %23 = vector.load %arg3[%c2_15, %c0_16] : memref<16x32xf32, #tpu.memory_space<vmem>>, vector<1x32xf32>
    tpu.vector_store %arg3[%c2_15, %c0_16], %22 {strides = array<i32>} : memref<16x32xf32, #tpu.memory_space<vmem>>, vector<1x32xf32>,
    %c3 = arith.constant 3 : index
    %24 = memref.load %arg0[%c3] : memref<16xi32, #tpu.memory_space<smem>>
    %25 = arith.index_cast %24 : i32 to index
    %c0_17 = arith.constant 0 : index
    %26 = vector.load %arg1[%25, %c0_17] : memref<40x32xf32, #tpu.memory_space<vmem>>, vector<1x32xf32>
    %cst_18 = arith.constant 5.65685415 : f32
    %27 = vector.broadcast %cst_18 : f32 to vector<1x32xf32>
    %28 = arith.mulf %26, %27 : vector<1x32xf32>
    %c3_19 = arith.constant 3 : index
    %c0_20 = arith.constant 0 : index
    %29 = vector.load %arg2[%c3_19, %c0_20] : memref<8x32xf32, #tpu.memory_space<vmem>>, vector<1x32xf32>
    %30 = arith.addf %28, %29 : vector<1x32xf32>
    %c3_21 = arith.constant 3 : index
    %c0_22 = arith.constant 0 : index
    %31 = vector.load %arg3[%c3_21, %c0_22] : memref<16x32xf32, #tpu.memory_space<vmem>>, vector<1x32xf32>
    tpu.vector_store %arg3[%c3_21, %c0_22], %30 {strides = array<i32>} : memref<16x32xf32, #tpu.memory_space<vmem>>, vector<1x32xf32>,
    %c4 = arith.constant 4 : index
    %32 = memref.load %arg0[%c4] : memref<16xi32, #tpu.memory_space<smem>>
    %33 = arith.index_cast %32 : i32 to index
    %c0_23 = arith.constant 0 : index
    %34 = vector.load %arg1[%33, %c0_23] : memref<40x32xf32, #tpu.memory_space<vmem>>, vector<1x32xf32>
    %cst_24 = arith.constant 5.65685415 : f32
    %35 = vector.broadcast %cst_24 : f32 to vector<1x32xf32>
    %36 = arith.mulf %34, %35 : vector<1x32xf32>
    %c4_25 = arith.constant 4 : index
    %c0_26 = arith.constant 0 : index
    %37 = vector.load %arg2[%c4_25, %c0_26] : memref<8x32xf32, #tpu.memory_space<vmem>>, vector<1x32xf32>
    %38 = arith.addf %36, %37 : vector<1x32xf32>
    %c4_27 = arith.constant 4 : index
    %c0_28 = arith.constant 0 : index
    %39 = vector.load %arg3[%c4_27, %c0_28] : memref<16x32xf32, #tpu.memory_space<vmem>>, vector<1x32xf32>
    tpu.vector_store %arg3[%c4_27, %c0_28], %38 {strides = array<i32>} : memref<16x32xf32, #tpu.memory_space<vmem>>, vector<1x32xf32>,
    %c5 = arith.constant 5 : index
    %40 = memref.load %arg0[%c5] : memref<16xi32, #tpu.memory_space<smem>>
    %41 = arith.index_cast %40 : i32 to index
    %c0_29 = arith.constant 0 : index
    %42 = vector.load %arg1[%41, %c0_29] : memref<40x32xf32, #tpu.memory_space<vmem>>, vector<1x32xf32>
    %cst_30 = arith.constant 5.65685415 : f32
    %43 = vector.broadcast %cst_30 : f32 to vector<1x32xf32>
    %44 = arith.mulf %42, %43 : vector<1x32xf32>
    %c5_31 = arith.constant 5 : index
    %c0_32 = arith.constant 0 : index
    %45 = vector.load %arg2[%c5_31, %c0_32] : memref<8x32xf32, #tpu.memory_space<vmem>>, vector<1x32xf32>
    %46 = arith.addf %44, %45 : vector<1x32xf32>
    %c5_33 = arith.constant 5 : index
    %c0_34 = arith.constant 0 : index
    %47 = vector.load %arg3[%c5_33, %c0_34] : memref<16x32xf32, #tpu.memory_space<vmem>>, vector<1x32xf32>
    tpu.vector_store %arg3[%c5_33, %c0_34], %46 {strides = array<i32>} : memref<16x32xf32, #tpu.memory_space<vmem>>, vector<1x32xf32>,
    %c6 = arith.constant 6 : index
    %48 = memref.load %arg0[%c6] : memref<16xi32, #tpu.memory_space<smem>>
    %49 = arith.index_cast %48 : i32 to index
    %c0_35 = arith.constant 0 : index
    %50 = vector.load %arg1[%49, %c0_35] : memref<40x32xf32, #tpu.memory_space<vmem>>, vector<1x32xf32>
    %cst_36 = arith.constant 5.65685415 : f32
    %51 = vector.broadcast %cst_36 : f32 to vector<1x32xf32>
    %52 = arith.mulf %50, %51 : vector<1x32xf32>
    %c6_37 = arith.constant 6 : index
    %c0_38 = arith.constant 0 : index
    %53 = vector.load %arg2[%c6_37, %c0_38] : memref<8x32xf32, #tpu.memory_space<vmem>>, vector<1x32xf32>
    %54 = arith.addf %52, %53 : vector<1x32xf32>
    %c6_39 = arith.constant 6 : index
    %c0_40 = arith.constant 0 : index
    %55 = vector.load %arg3[%c6_39, %c0_40] : memref<16x32xf32, #tpu.memory_space<vmem>>, vector<1x32xf32>
    tpu.vector_store %arg3[%c6_39, %c0_40], %54 {strides = array<i32>} : memref<16x32xf32, #tpu.memory_space<vmem>>, vector<1x32xf32>,
    %c7 = arith.constant 7 : index
    %56 = memref.load %arg0[%c7] : memref<16xi32, #tpu.memory_space<smem>>
    %57 = arith.index_cast %56 : i32 to index
    %c0_41 = arith.constant 0 : index
    %58 = vector.load %arg1[%57, %c0_41] : memref<40x32xf32, #tpu.memory_space<vmem>>, vector<1x32xf32>
    %cst_42 = arith.constant 5.65685415 : f32
    %59 = vector.broadcast %cst_42 : f32 to vector<1x32xf32>
    %60 = arith.mulf %58, %59 : vector<1x32xf32>
    %c7_43 = arith.constant 7 : index
    %c0_44 = arith.constant 0 : index
    %61 = vector.load %arg2[%c7_43, %c0_44] : memref<8x32xf32, #tpu.memory_space<vmem>>, vector<1x32xf32>
    %62 = arith.addf %60, %61 : vector<1x32xf32>
    %c7_45 = arith.constant 7 : index
    %c0_46 = arith.constant 0 : index
    %63 = vector.load %arg3[%c7_45, %c0_46] : memref<16x32xf32, #tpu.memory_space<vmem>>, vector<1x32xf32>
    tpu.vector_store %arg3[%c7_45, %c0_46], %62 {strides = array<i32>} : memref<16x32xf32, #tpu.memory_space<vmem>>, vector<1x32xf32>,
    %c8 = arith.constant 8 : index
    %64 = memref.load %arg0[%c8] : memref<16xi32, #tpu.memory_space<smem>>
    %65 = arith.index_cast %64 : i32 to index
    %c0_47 = arith.constant 0 : index
    %66 = vector.load %arg1[%65, %c0_47] : memref<40x32xf32, #tpu.memory_space<vmem>>, vector<1x32xf32>
    %cst_48 = arith.constant 5.65685415 : f32
    %67 = vector.broadcast %cst_48 : f32 to vector<1x32xf32>
    %68 = arith.mulf %66, %67 : vector<1x32xf32>
    %c0_49 = arith.constant 0 : index
    %c0_50 = arith.constant 0 : index
    %69 = vector.load %arg2[%c0_49, %c0_50] : memref<8x32xf32, #tpu.memory_space<vmem>>, vector<1x32xf32>
    %70 = arith.addf %68, %69 : vector<1x32xf32>
    %c8_51 = arith.constant 8 : index
    %c0_52 = arith.constant 0 : index
    %71 = vector.load %arg3[%c8_51, %c0_52] : memref<16x32xf32, #tpu.memory_space<vmem>>, vector<1x32xf32>
    tpu.vector_store %arg3[%c8_51, %c0_52], %70 {strides = array<i32>} : memref<16x32xf32, #tpu.memory_space<vmem>>, vector<1x32xf32>,
    %c9 = arith.constant 9 : index
    %72 = memref.load %arg0[%c9] : memref<16xi32, #tpu.memory_space<smem>>
    %73 = arith.index_cast %72 : i32 to index
    %c0_53 = arith.constant 0 : index
    %74 = vector.load %arg1[%73, %c0_53] : memref<40x32xf32, #tpu.memory_space<vmem>>, vector<1x32xf32>
    %cst_54 = arith.constant 5.65685415 : f32
    %75 = vector.broadcast %cst_54 : f32 to vector<1x32xf32>
    %76 = arith.mulf %74, %75 : vector<1x32xf32>
    %c1_55 = arith.constant 1 : index
    %c0_56 = arith.constant 0 : index
    %77 = vector.load %arg2[%c1_55, %c0_56] : memref<8x32xf32, #tpu.memory_space<vmem>>, vector<1x32xf32>
    %78 = arith.addf %76, %77 : vector<1x32xf32>
    %c9_57 = arith.constant 9 : index
    %c0_58 = arith.constant 0 : index
    %79 = vector.load %arg3[%c9_57, %c0_58] : memref<16x32xf32, #tpu.memory_space<vmem>>, vector<1x32xf32>
    tpu.vector_store %arg3[%c9_57, %c0_58], %78 {strides = array<i32>} : memref<16x32xf32, #tpu.memory_space<vmem>>, vector<1x32xf32>,
    %c10 = arith.constant 10 : index
    %80 = memref.load %arg0[%c10] : memref<16xi32, #tpu.memory_space<smem>>
    %81 = arith.index_cast %80 : i32 to index
    %c0_59 = arith.constant 0 : index
    %82 = vector.load %arg1[%81, %c0_59] : memref<40x32xf32, #tpu.memory_space<vmem>>, vector<1x32xf32>
    %cst_60 = arith.constant 5.65685415 : f32
    %83 = vector.broadcast %cst_60 : f32 to vector<1x32xf32>
    %84 = arith.mulf %82, %83 : vector<1x32xf32>
    %c2_61 = arith.constant 2 : index
    %c0_62 = arith.constant 0 : index
    %85 = vector.load %arg2[%c2_61, %c0_62] : memref<8x32xf32, #tpu.memory_space<vmem>>, vector<1x32xf32>
    %86 = arith.addf %84, %85 : vector<1x32xf32>
    %c10_63 = arith.constant 10 : index
    %c0_64 = arith.constant 0 : index
    %87 = vector.load %arg3[%c10_63, %c0_64] : memref<16x32xf32, #tpu.memory_space<vmem>>, vector<1x32xf32>
    tpu.vector_store %arg3[%c10_63, %c0_64], %86 {strides = array<i32>} : memref<16x32xf32, #tpu.memory_space<vmem>>, vector<1x32xf32>,
    %c11 = arith.constant 11 : index
    %88 = memref.load %arg0[%c11] : memref<16xi32, #tpu.memory_space<smem>>
    %89 = arith.index_cast %88 : i32 to index
    %c0_65 = arith.constant 0 : index
    %90 = vector.load %arg1[%89, %c0_65] : memref<40x32xf32, #tpu.memory_space<vmem>>, vector<1x32xf32>
    %cst_66 = arith.constant 5.65685415 : f32
    %91 = vector.broadcast %cst_66 : f32 to vector<1x32xf32>
    %92 = arith.mulf %90, %91 : vector<1x32xf32>
    %c3_67 = arith.constant 3 : index
    %c0_68 = arith.constant 0 : index
    %93 = vector.load %arg2[%c3_67, %c0_68] : memref<8x32xf32, #tpu.memory_space<vmem>>, vector<1x32xf32>
    %94 = arith.addf %92, %93 : vector<1x32xf32>
    %c11_69 = arith.constant 11 : index
    %c0_70 = arith.constant 0 : index
    %95 = vector.load %arg3[%c11_69, %c0_70] : memref<16x32xf32, #tpu.memory_space<vmem>>, vector<1x32xf32>
    tpu.vector_store %arg3[%c11_69, %c0_70], %94 {strides = array<i32>} : memref<16x32xf32, #tpu.memory_space<vmem>>, vector<1x32xf32>,
    %c12 = arith.constant 12 : index
    %96 = memref.load %arg0[%c12] : memref<16xi32, #tpu.memory_space<smem>>
    %97 = arith.index_cast %96 : i32 to index
    %c0_71 = arith.constant 0 : index
    %98 = vector.load %arg1[%97, %c0_71] : memref<40x32xf32, #tpu.memory_space<vmem>>, vector<1x32xf32>
    %cst_72 = arith.constant 5.65685415 : f32
    %99 = vector.broadcast %cst_72 : f32 to vector<1x32xf32>
    %100 = arith.mulf %98, %99 : vector<1x32xf32>
    %c4_73 = arith.constant 4 : index
    %c0_74 = arith.constant 0 : index
    %101 = vector.load %arg2[%c4_73, %c0_74] : memref<8x32xf32, #tpu.memory_space<vmem>>, vector<1x32xf32>
    %102 = arith.addf %100, %101 : vector<1x32xf32>
    %c12_75 = arith.constant 12 : index
    %c0_76 = arith.constant 0 : index
    %103 = vector.load %arg3[%c12_75, %c0_76] : memref<16x32xf32, #tpu.memory_space<vmem>>, vector<1x32xf32>
    tpu.vector_store %arg3[%c12_75, %c0_76], %102 {strides = array<i32>} : memref<16x32xf32, #tpu.memory_space<vmem>>, vector<1x32xf32>,
    %c13 = arith.constant 13 : index
    %104 = memref.load %arg0[%c13] : memref<16xi32, #tpu.memory_space<smem>>
    %105 = arith.index_cast %104 : i32 to index
    %c0_77 = arith.constant 0 : index
    %106 = vector.load %arg1[%105, %c0_77] : memref<40x32xf32, #tpu.memory_space<vmem>>, vector<1x32xf32>
    %cst_78 = arith.constant 5.65685415 : f32
    %107 = vector.broadcast %cst_78 : f32 to vector<1x32xf32>
    %108 = arith.mulf %106, %107 : vector<1x32xf32>
    %c5_79 = arith.constant 5 : index
    %c0_80 = arith.constant 0 : index
    %109 = vector.load %arg2[%c5_79, %c0_80] : memref<8x32xf32, #tpu.memory_space<vmem>>, vector<1x32xf32>
    %110 = arith.addf %108, %109 : vector<1x32xf32>
    %c13_81 = arith.constant 13 : index
    %c0_82 = arith.constant 0 : index
    %111 = vector.load %arg3[%c13_81, %c0_82] : memref<16x32xf32, #tpu.memory_space<vmem>>, vector<1x32xf32>
    tpu.vector_store %arg3[%c13_81, %c0_82], %110 {strides = array<i32>} : memref<16x32xf32, #tpu.memory_space<vmem>>, vector<1x32xf32>,
    %c14 = arith.constant 14 : index
    %112 = memref.load %arg0[%c14] : memref<16xi32, #tpu.memory_space<smem>>
    %113 = arith.index_cast %112 : i32 to index
    %c0_83 = arith.constant 0 : index
    %114 = vector.load %arg1[%113, %c0_83] : memref<40x32xf32, #tpu.memory_space<vmem>>, vector<1x32xf32>
    %cst_84 = arith.constant 5.65685415 : f32
    %115 = vector.broadcast %cst_84 : f32 to vector<1x32xf32>
    %116 = arith.mulf %114, %115 : vector<1x32xf32>
    %c6_85 = arith.constant 6 : index
    %c0_86 = arith.constant 0 : index
    %117 = vector.load %arg2[%c6_85, %c0_86] : memref<8x32xf32, #tpu.memory_space<vmem>>, vector<1x32xf32>
    %118 = arith.addf %116, %117 : vector<1x32xf32>
    %c14_87 = arith.constant 14 : index
    %c0_88 = arith.constant 0 : index
    %119 = vector.load %arg3[%c14_87, %c0_88] : memref<16x32xf32, #tpu.memory_space<vmem>>, vector<1x32xf32>
    tpu.vector_store %arg3[%c14_87, %c0_88], %118 {strides = array<i32>} : memref<16x32xf32, #tpu.memory_space<vmem>>, vector<1x32xf32>,
    %c15 = arith.constant 15 : index
    %120 = memref.load %arg0[%c15] : memref<16xi32, #tpu.memory_space<smem>>
    %121 = arith.index_cast %120 : i32 to index
    %c0_89 = arith.constant 0 : index
    %122 = vector.load %arg1[%121, %c0_89] : memref<40x32xf32, #tpu.memory_space<vmem>>, vector<1x32xf32>
    %cst_90 = arith.constant 5.65685415 : f32
    %123 = vector.broadcast %cst_90 : f32 to vector<1x32xf32>
    %124 = arith.mulf %122, %123 : vector<1x32xf32>
    %c7_91 = arith.constant 7 : index
    %c0_92 = arith.constant 0 : index
    %125 = vector.load %arg2[%c7_91, %c0_92] : memref<8x32xf32, #tpu.memory_space<vmem>>, vector<1x32xf32>
    %126 = arith.addf %124, %125 : vector<1x32xf32>
    %c15_93 = arith.constant 15 : index
    %c0_94 = arith.constant 0 : index
    %127 = vector.load %arg3[%c15_93, %c0_94] : memref<16x32xf32, #tpu.memory_space<vmem>>, vector<1x32xf32>
    tpu.vector_store %arg3[%c15_93, %c0_94], %126 {strides = array<i32>} : memref<16x32xf32, #tpu.memory_space<vmem>>, vector<1x32xf32>,
    return
  }
}

module attributes {stable_mosaic.version = 11 : i64} {
  func.func @decoder_kernel(%arg0: memref<16x32xf32, #tpu.memory_space<vmem>>, %arg1: memref<32x128xbf16, #tpu.memory_space<vmem>>, %arg2: memref<1x128xf32, #tpu.memory_space<vmem>>, %arg3: memref<16x128xf32, #tpu.memory_space<vmem>>) attributes {dimension_semantics = [], scalar_prefetch = 0 : i64, scratch_operands = 0 : i64, tpu.core_type = #tpu.core_type<tc>} {
    %c0 = arith.constant 0 : index
    %c0_0 = arith.constant 0 : index
    %0 = vector.load %arg0[%c0, %c0_0] : memref<16x32xf32, #tpu.memory_space<vmem>>, vector<16x32xf32>
    %1 = arith.truncf %0 : vector<16x32xf32> to vector<16x32xbf16>
    %c0_1 = arith.constant 0 : index
    %c0_2 = arith.constant 0 : index
    %2 = vector.load %arg1[%c0_1, %c0_2] : memref<32x128xbf16, #tpu.memory_space<vmem>>, vector<32x128xbf16>
    %cst = arith.constant dense<0.000000e+00> : vector<16x128xf32>
    %3 = tpu.matmul %1, %2, %cst {dimension_numbers = #tpu.dot_dimension_numbers<[1], [0], [0], [1], [0, 0, 1, 1], [], []>} : vector<16x32xbf16>, vector<32x128xbf16>, vector<16x128xf32> -> vector<16x128xf32>
    %c0_3 = arith.constant 0 : index
    %c0_4 = arith.constant 0 : index
    %4 = vector.load %arg2[%c0_3, %c0_4] : memref<1x128xf32, #tpu.memory_space<vmem>>, vector<1x128xf32>
    %5 = vector.broadcast %4 : vector<1x128xf32> to vector<16x128xf32>
    %6 = arith.addf %3, %5 : vector<16x128xf32>
    %c0_5 = arith.constant 0 : index
    %c0_6 = arith.constant 0 : index
    %7 = vector.load %arg3[%c0_5, %c0_6] : memref<16x128xf32, #tpu.memory_space<vmem>>, vector<16x128xf32>
    tpu.vector_store %arg3[%c0_5, %c0_6], %6 {strides = array<i32>} : memref<16x128xf32, #tpu.memory_space<vmem>>, vector<16x128xf32>,
    return
  }
}

module attributes {stable_mosaic.version = 11 : i64} {
  func.func @fused_encoder_kernel(%arg0: i32, %arg1: memref<16x32xf32, #tpu.memory_space<vmem>>, %arg2: memref<8x8xf32, #tpu.memory_space<vmem>>, %arg3: memref<1x32x96xbf16, #tpu.memory_space<vmem>>, %arg4: memref<1x1x96xf32, #tpu.memory_space<vmem>>, %arg5: memref<1x32x32xbf16, #tpu.memory_space<vmem>>, %arg6: memref<1x1x32xf32, #tpu.memory_space<vmem>>, %arg7: memref<1x1x32xf32, #tpu.memory_space<vmem>>, %arg8: memref<1x1x32xf32, #tpu.memory_space<vmem>>, %arg9: memref<1x32x64xbf16, #tpu.memory_space<vmem>>, %arg10: memref<1x1x64xf32, #tpu.memory_space<vmem>>, %arg11: memref<1x64x32xbf16, #tpu.memory_space<vmem>>, %arg12: memref<1x1x32xf32, #tpu.memory_space<vmem>>, %arg13: memref<1x1x32xf32, #tpu.memory_space<vmem>>, %arg14: memref<1x1x32xf32, #tpu.memory_space<vmem>>, %arg15: memref<16x32xf32, #tpu.memory_space<vmem>>, %arg16: memref<16x32xf32, #tpu.memory_space<vmem>>) attributes {dimension_semantics = [#tpu.dimension_semantics<arbitrary>], iteration_bounds = array<i64: 2>, scalar_prefetch = 0 : i64, scratch_operands = 1 : i64, tpu.core_type = #tpu.core_type<tc>, window_params = [{pipeline_mode = #tpu.pipeline_mode<synchronous>, transform_indices = @transform_0, window_bounds = array<i64: 16, 32>}, {pipeline_mode = #tpu.pipeline_mode<synchronous>, transform_indices = @transform_1, window_bounds = array<i64: 8, 8>}, {transform_indices = @transform_2, window_bounds = array<i64: 1, 32, 96>}, {transform_indices = @transform_3, window_bounds = array<i64: 1, 1, 96>}, {transform_indices = @transform_4, window_bounds = array<i64: 1, 32, 32>}, {transform_indices = @transform_5, window_bounds = array<i64: 1, 1, 32>}, {transform_indices = @transform_6, window_bounds = array<i64: 1, 1, 32>}, {transform_indices = @transform_7, window_bounds = array<i64: 1, 1, 32>}, {transform_indices = @transform_8, window_bounds = array<i64: 1, 32, 64>}, {transform_indices = @transform_9, window_bounds = array<i64: 1, 1, 64>}, {transform_indices = @transform_10, window_bounds = array<i64: 1, 64, 32>}, {transform_indices = @transform_11, window_bounds = array<i64: 1, 1, 32>}, {transform_indices = @transform_12, window_bounds = array<i64: 1, 1, 32>}, {transform_indices = @transform_13, window_bounds = array<i64: 1, 1, 32>}, {pipeline_mode = #tpu.pipeline_mode<synchronous>, transform_indices = @transform_14, window_bounds = array<i64: 16, 32>}]} {
    %c0_i32 = arith.constant 0 : i32
    %0 = arith.cmpi eq, %arg0, %c0_i32 : i32
    %1 = arith.extui %0 : i1 to i32
    %c0_i32_0 = arith.constant 0 : i32
    %2 = arith.cmpi ne, %1, %c0_i32_0 : i32
    scf.if %2 {
      %c0_78 = arith.constant 0 : index
      %c0_79 = arith.constant 0 : index
      %187 = vector.load %arg1[%c0_78, %c0_79] : memref<16x32xf32, #tpu.memory_space<vmem>>, vector<16x32xf32>
      %c0_80 = arith.constant 0 : index
      %c0_81 = arith.constant 0 : index
      %188 = vector.load %arg16[%c0_80, %c0_81] : memref<16x32xf32, #tpu.memory_space<vmem>>, vector<16x32xf32>
      tpu.vector_store %arg16[%c0_80, %c0_81], %187 {strides = array<i32>} : memref<16x32xf32, #tpu.memory_space<vmem>>, vector<16x32xf32>,
    } else {
    }
    %c0 = arith.constant 0 : index
    %c0_1 = arith.constant 0 : index
    %3 = vector.load %arg16[%c0, %c0_1] : memref<16x32xf32, #tpu.memory_space<vmem>>, vector<16x32xf32>
    %4 = arith.truncf %3 : vector<16x32xf32> to vector<16x32xbf16>
    %c0_2 = arith.constant 0 : index
    %c0_3 = arith.constant 0 : index
    %c0_4 = arith.constant 0 : index
    %5 = vector.load %arg3[%c0_2, %c0_3, %c0_4] : memref<1x32x96xbf16, #tpu.memory_space<vmem>>, vector<1x32x96xbf16>
    %6 = vector.shape_cast %5 : vector<1x32x96xbf16> to vector<32x96xbf16>
    %cst = arith.constant dense<0.000000e+00> : vector<16x96xf32>
    %7 = tpu.matmul %4, %6, %cst {dimension_numbers = #tpu.dot_dimension_numbers<[1], [0], [0], [1], [0, 0, 1, 1], [], []>} : vector<16x32xbf16>, vector<32x96xbf16>, vector<16x96xf32> -> vector<16x96xf32>
    %c0_5 = arith.constant 0 : index
    %c0_6 = arith.constant 0 : index
    %c0_7 = arith.constant 0 : index
    %8 = vector.load %arg4[%c0_5, %c0_6, %c0_7] : memref<1x1x96xf32, #tpu.memory_space<vmem>>, vector<1x1x96xf32>
    %9 = vector.shape_cast %8 : vector<1x1x96xf32> to vector<1x96xf32>
    %10 = vector.broadcast %9 : vector<1x96xf32> to vector<16x96xf32>
    %11 = arith.addf %7, %10 : vector<16x96xf32>
    %12 = vector.extract_strided_slice %11 {offsets = [0, 0], sizes = [16, 32], strides = [1, 1]} : vector<16x96xf32> to vector<16x32xf32>
    %13 = vector.shape_cast %12 : vector<16x32xf32> to vector<2x8x32xf32>
    %14 = arith.truncf %13 : vector<2x8x32xf32> to vector<2x8x32xbf16>
    %15 = vector.extract_strided_slice %11 {offsets = [0, 32], sizes = [16, 32], strides = [1, 1]} : vector<16x96xf32> to vector<16x32xf32>
    %16 = vector.shape_cast %15 : vector<16x32xf32> to vector<2x8x32xf32>
    %17 = arith.truncf %16 : vector<2x8x32xf32> to vector<2x8x32xbf16>
    %18 = vector.extract_strided_slice %11 {offsets = [0, 64], sizes = [16, 32], strides = [1, 1]} : vector<16x96xf32> to vector<16x32xf32>
    %19 = vector.shape_cast %18 : vector<16x32xf32> to vector<2x8x32xf32>
    %20 = arith.truncf %19 : vector<2x8x32xf32> to vector<2x8x32xbf16>
    %c0_8 = arith.constant 0 : index
    %c0_9 = arith.constant 0 : index
    %21 = vector.load %arg2[%c0_8, %c0_9] : memref<8x8xf32, #tpu.memory_space<vmem>>, vector<8x8xf32>
    %22 = vector.shape_cast %21 : vector<8x8xf32> to vector<1x8x8xf32>
    %23 = vector.extract_strided_slice %14 {offsets = [0, 0, 0], sizes = [2, 8, 8], strides = [1, 1, 1]} : vector<2x8x32xbf16> to vector<2x8x8xbf16>
    %24 = vector.extract_strided_slice %17 {offsets = [0, 0, 0], sizes = [2, 8, 8], strides = [1, 1, 1]} : vector<2x8x32xbf16> to vector<2x8x8xbf16>
    "tpu.trace_start"() <{level = 10 : i32, message = "bsd,btd->bst"}> : () -> ()
    %cst_10 = arith.constant dense<0.000000e+00> : vector<2x8x8xf32>
    %25 = tpu.matmul %23, %24, %cst_10 {dimension_numbers = #tpu.dot_dimension_numbers<[2], [2], [1], [1], [0, 0, 0, 1, 1, 1], [0], [0]>} : vector<2x8x8xbf16>, vector<2x8x8xbf16>, vector<2x8x8xf32> -> vector<2x8x8xf32>
    "tpu.trace_stop"() : () -> ()
    %cst_11 = arith.constant 0.353553385 : f32
    %26 = vector.broadcast %cst_11 : f32 to vector<2x8x8xf32>
    %27 = arith.mulf %25, %26 : vector<2x8x8xf32>
    %28 = vector.broadcast %22 : vector<1x8x8xf32> to vector<2x8x8xf32>
    %29 = arith.addf %27, %28 : vector<2x8x8xf32>
    %cst_12 = arith.constant dense<0xFF800000> : vector<2x8xf32>
    %30 = vector.multi_reduction <maximumf>, %29, %cst_12 [2] : vector<2x8x8xf32> to vector<2x8xf32>
    %31 = vector.shape_cast %30 : vector<2x8xf32> to vector<2x8x1xf32>
    %32 = vector.broadcast %31 : vector<2x8x1xf32> to vector<2x8x8xf32>
    %33 = arith.subf %29, %32 : vector<2x8x8xf32>
    %34 = math.exp %33 : vector<2x8x8xf32>
    %cst_13 = arith.constant dense<0.000000e+00> : vector<2x8xf32>
    %35 = vector.multi_reduction <add>, %34, %cst_13 [2] : vector<2x8x8xf32> to vector<2x8xf32>
    %36 = vector.shape_cast %35 : vector<2x8xf32> to vector<2x8x1xf32>
    %37 = tpu.reciprocal %36 {approx = true} : vector<2x8x1xf32> -> vector<2x8x1xf32>
    %38 = vector.broadcast %37 : vector<2x8x1xf32> to vector<2x8x8xf32>
    %39 = arith.mulf %34, %38 : vector<2x8x8xf32>
    %40 = arith.truncf %39 : vector<2x8x8xf32> to vector<2x8x8xbf16>
    %41 = vector.extract_strided_slice %20 {offsets = [0, 0, 0], sizes = [2, 8, 8], strides = [1, 1, 1]} : vector<2x8x32xbf16> to vector<2x8x8xbf16>
    "tpu.trace_start"() <{level = 10 : i32, message = "bst,btd->bsd"}> : () -> ()
    %cst_14 = arith.constant dense<0.000000e+00> : vector<2x8x8xf32>
    %42 = tpu.matmul %40, %41, %cst_14 {dimension_numbers = #tpu.dot_dimension_numbers<[2], [1], [1], [2], [0, 0, 0, 1, 1, 2], [0], [0]>} : vector<2x8x8xbf16>, vector<2x8x8xbf16>, vector<2x8x8xf32> -> vector<2x8x8xf32>
    "tpu.trace_stop"() : () -> ()
    %43 = vector.extract_strided_slice %14 {offsets = [0, 0, 8], sizes = [2, 8, 8], strides = [1, 1, 1]} : vector<2x8x32xbf16> to vector<2x8x8xbf16>
    %44 = vector.extract_strided_slice %17 {offsets = [0, 0, 8], sizes = [2, 8, 8], strides = [1, 1, 1]} : vector<2x8x32xbf16> to vector<2x8x8xbf16>
    "tpu.trace_start"() <{level = 10 : i32, message = "bsd,btd->bst"}> : () -> ()
    %cst_15 = arith.constant dense<0.000000e+00> : vector<2x8x8xf32>
    %45 = tpu.matmul %43, %44, %cst_15 {dimension_numbers = #tpu.dot_dimension_numbers<[2], [2], [1], [1], [0, 0, 0, 1, 1, 1], [0], [0]>} : vector<2x8x8xbf16>, vector<2x8x8xbf16>, vector<2x8x8xf32> -> vector<2x8x8xf32>
    "tpu.trace_stop"() : () -> ()
    %cst_16 = arith.constant 0.353553385 : f32
    %46 = vector.broadcast %cst_16 : f32 to vector<2x8x8xf32>
    %47 = arith.mulf %45, %46 : vector<2x8x8xf32>
    %48 = vector.broadcast %22 : vector<1x8x8xf32> to vector<2x8x8xf32>
    %49 = arith.addf %47, %48 : vector<2x8x8xf32>
    %cst_17 = arith.constant dense<0xFF800000> : vector<2x8xf32>
    %50 = vector.multi_reduction <maximumf>, %49, %cst_17 [2] : vector<2x8x8xf32> to vector<2x8xf32>
    %51 = vector.shape_cast %50 : vector<2x8xf32> to vector<2x8x1xf32>
    %52 = vector.broadcast %51 : vector<2x8x1xf32> to vector<2x8x8xf32>
    %53 = arith.subf %49, %52 : vector<2x8x8xf32>
    %54 = math.exp %53 : vector<2x8x8xf32>
    %cst_18 = arith.constant dense<0.000000e+00> : vector<2x8xf32>
    %55 = vector.multi_reduction <add>, %54, %cst_18 [2] : vector<2x8x8xf32> to vector<2x8xf32>
    %56 = vector.shape_cast %55 : vector<2x8xf32> to vector<2x8x1xf32>
    %57 = tpu.reciprocal %56 {approx = true} : vector<2x8x1xf32> -> vector<2x8x1xf32>
    %58 = vector.broadcast %57 : vector<2x8x1xf32> to vector<2x8x8xf32>
    %59 = arith.mulf %54, %58 : vector<2x8x8xf32>
    %60 = arith.truncf %59 : vector<2x8x8xf32> to vector<2x8x8xbf16>
    %61 = vector.extract_strided_slice %20 {offsets = [0, 0, 8], sizes = [2, 8, 8], strides = [1, 1, 1]} : vector<2x8x32xbf16> to vector<2x8x8xbf16>
    "tpu.trace_start"() <{level = 10 : i32, message = "bst,btd->bsd"}> : () -> ()
    %cst_19 = arith.constant dense<0.000000e+00> : vector<2x8x8xf32>
    %62 = tpu.matmul %60, %61, %cst_19 {dimension_numbers = #tpu.dot_dimension_numbers<[2], [1], [1], [2], [0, 0, 0, 1, 1, 2], [0], [0]>} : vector<2x8x8xbf16>, vector<2x8x8xbf16>, vector<2x8x8xf32> -> vector<2x8x8xf32>
    "tpu.trace_stop"() : () -> ()
    %63 = vector.extract_strided_slice %14 {offsets = [0, 0, 16], sizes = [2, 8, 8], strides = [1, 1, 1]} : vector<2x8x32xbf16> to vector<2x8x8xbf16>
    %64 = vector.extract_strided_slice %17 {offsets = [0, 0, 16], sizes = [2, 8, 8], strides = [1, 1, 1]} : vector<2x8x32xbf16> to vector<2x8x8xbf16>
    "tpu.trace_start"() <{level = 10 : i32, message = "bsd,btd->bst"}> : () -> ()
    %cst_20 = arith.constant dense<0.000000e+00> : vector<2x8x8xf32>
    %65 = tpu.matmul %63, %64, %cst_20 {dimension_numbers = #tpu.dot_dimension_numbers<[2], [2], [1], [1], [0, 0, 0, 1, 1, 1], [0], [0]>} : vector<2x8x8xbf16>, vector<2x8x8xbf16>, vector<2x8x8xf32> -> vector<2x8x8xf32>
    "tpu.trace_stop"() : () -> ()
    %cst_21 = arith.constant 0.353553385 : f32
    %66 = vector.broadcast %cst_21 : f32 to vector<2x8x8xf32>
    %67 = arith.mulf %65, %66 : vector<2x8x8xf32>
    %68 = vector.broadcast %22 : vector<1x8x8xf32> to vector<2x8x8xf32>
    %69 = arith.addf %67, %68 : vector<2x8x8xf32>
    %cst_22 = arith.constant dense<0xFF800000> : vector<2x8xf32>
    %70 = vector.multi_reduction <maximumf>, %69, %cst_22 [2] : vector<2x8x8xf32> to vector<2x8xf32>
    %71 = vector.shape_cast %70 : vector<2x8xf32> to vector<2x8x1xf32>
    %72 = vector.broadcast %71 : vector<2x8x1xf32> to vector<2x8x8xf32>
    %73 = arith.subf %69, %72 : vector<2x8x8xf32>
    %74 = math.exp %73 : vector<2x8x8xf32>
    %cst_23 = arith.constant dense<0.000000e+00> : vector<2x8xf32>
    %75 = vector.multi_reduction <add>, %74, %cst_23 [2] : vector<2x8x8xf32> to vector<2x8xf32>
    %76 = vector.shape_cast %75 : vector<2x8xf32> to vector<2x8x1xf32>
    %77 = tpu.reciprocal %76 {approx = true} : vector<2x8x1xf32> -> vector<2x8x1xf32>
    %78 = vector.broadcast %77 : vector<2x8x1xf32> to vector<2x8x8xf32>
    %79 = arith.mulf %74, %78 : vector<2x8x8xf32>
    %80 = arith.truncf %79 : vector<2x8x8xf32> to vector<2x8x8xbf16>
    %81 = vector.extract_strided_slice %20 {offsets = [0, 0, 16], sizes = [2, 8, 8], strides = [1, 1, 1]} : vector<2x8x32xbf16> to vector<2x8x8xbf16>
    "tpu.trace_start"() <{level = 10 : i32, message = "bst,btd->bsd"}> : () -> ()
    %cst_24 = arith.constant dense<0.000000e+00> : vector<2x8x8xf32>
    %82 = tpu.matmul %80, %81, %cst_24 {dimension_numbers = #tpu.dot_dimension_numbers<[2], [1], [1], [2], [0, 0, 0, 1, 1, 2], [0], [0]>} : vector<2x8x8xbf16>, vector<2x8x8xbf16>, vector<2x8x8xf32> -> vector<2x8x8xf32>
    "tpu.trace_stop"() : () -> ()
    %83 = vector.extract_strided_slice %14 {offsets = [0, 0, 24], sizes = [2, 8, 8], strides = [1, 1, 1]} : vector<2x8x32xbf16> to vector<2x8x8xbf16>
    %84 = vector.extract_strided_slice %17 {offsets = [0, 0, 24], sizes = [2, 8, 8], strides = [1, 1, 1]} : vector<2x8x32xbf16> to vector<2x8x8xbf16>
    "tpu.trace_start"() <{level = 10 : i32, message = "bsd,btd->bst"}> : () -> ()
    %cst_25 = arith.constant dense<0.000000e+00> : vector<2x8x8xf32>
    %85 = tpu.matmul %83, %84, %cst_25 {dimension_numbers = #tpu.dot_dimension_numbers<[2], [2], [1], [1], [0, 0, 0, 1, 1, 1], [0], [0]>} : vector<2x8x8xbf16>, vector<2x8x8xbf16>, vector<2x8x8xf32> -> vector<2x8x8xf32>
    "tpu.trace_stop"() : () -> ()
    %cst_26 = arith.constant 0.353553385 : f32
    %86 = vector.broadcast %cst_26 : f32 to vector<2x8x8xf32>
    %87 = arith.mulf %85, %86 : vector<2x8x8xf32>
    %88 = vector.broadcast %22 : vector<1x8x8xf32> to vector<2x8x8xf32>
    %89 = arith.addf %87, %88 : vector<2x8x8xf32>
    %cst_27 = arith.constant dense<0xFF800000> : vector<2x8xf32>
    %90 = vector.multi_reduction <maximumf>, %89, %cst_27 [2] : vector<2x8x8xf32> to vector<2x8xf32>
    %91 = vector.shape_cast %90 : vector<2x8xf32> to vector<2x8x1xf32>
    %92 = vector.broadcast %91 : vector<2x8x1xf32> to vector<2x8x8xf32>
    %93 = arith.subf %89, %92 : vector<2x8x8xf32>
    %94 = math.exp %93 : vector<2x8x8xf32>
    %cst_28 = arith.constant dense<0.000000e+00> : vector<2x8xf32>
    %95 = vector.multi_reduction <add>, %94, %cst_28 [2] : vector<2x8x8xf32> to vector<2x8xf32>
    %96 = vector.shape_cast %95 : vector<2x8xf32> to vector<2x8x1xf32>
    %97 = tpu.reciprocal %96 {approx = true} : vector<2x8x1xf32> -> vector<2x8x1xf32>
    %98 = vector.broadcast %97 : vector<2x8x1xf32> to vector<2x8x8xf32>
    %99 = arith.mulf %94, %98 : vector<2x8x8xf32>
    %100 = arith.truncf %99 : vector<2x8x8xf32> to vector<2x8x8xbf16>
    %101 = vector.extract_strided_slice %20 {offsets = [0, 0, 24], sizes = [2, 8, 8], strides = [1, 1, 1]} : vector<2x8x32xbf16> to vector<2x8x8xbf16>
    "tpu.trace_start"() <{level = 10 : i32, message = "bst,btd->bsd"}> : () -> ()
    %cst_29 = arith.constant dense<0.000000e+00> : vector<2x8x8xf32>
    %102 = tpu.matmul %100, %101, %cst_29 {dimension_numbers = #tpu.dot_dimension_numbers<[2], [1], [1], [2], [0, 0, 0, 1, 1, 2], [0], [0]>} : vector<2x8x8xbf16>, vector<2x8x8xbf16>, vector<2x8x8xf32> -> vector<2x8x8xf32>
    "tpu.trace_stop"() : () -> ()
    %103 = tpu.concatenate %42, %62, %82, %102 in 2 : vector<2x8x8xf32>, vector<2x8x8xf32>, vector<2x8x8xf32>, vector<2x8x8xf32> -> vector<2x8x32xf32>
    %104 = vector.shape_cast %103 : vector<2x8x32xf32> to vector<16x32xf32>
    %105 = arith.truncf %104 : vector<16x32xf32> to vector<16x32xbf16>
    %c0_30 = arith.constant 0 : index
    %c0_31 = arith.constant 0 : index
    %c0_32 = arith.constant 0 : index
    %106 = vector.load %arg5[%c0_30, %c0_31, %c0_32] : memref<1x32x32xbf16, #tpu.memory_space<vmem>>, vector<1x32x32xbf16>
    %107 = vector.shape_cast %106 : vector<1x32x32xbf16> to vector<32x32xbf16>
    %cst_33 = arith.constant dense<0.000000e+00> : vector<16x32xf32>
    %108 = tpu.matmul %105, %107, %cst_33 {dimension_numbers = #tpu.dot_dimension_numbers<[1], [0], [0], [1], [0, 0, 1, 1], [], []>} : vector<16x32xbf16>, vector<32x32xbf16>, vector<16x32xf32> -> vector<16x32xf32>
    %c0_34 = arith.constant 0 : index
    %c0_35 = arith.constant 0 : index
    %c0_36 = arith.constant 0 : index
    %109 = vector.load %arg6[%c0_34, %c0_35, %c0_36] : memref<1x1x32xf32, #tpu.memory_space<vmem>>, vector<1x1x32xf32>
    %110 = vector.shape_cast %109 : vector<1x1x32xf32> to vector<1x32xf32>
    %111 = vector.broadcast %110 : vector<1x32xf32> to vector<16x32xf32>
    %112 = arith.addf %108, %111 : vector<16x32xf32>
    %113 = arith.addf %3, %112 : vector<16x32xf32>
    %c0_37 = arith.constant 0 : index
    %c0_38 = arith.constant 0 : index
    %c0_39 = arith.constant 0 : index
    %114 = vector.load %arg7[%c0_37, %c0_38, %c0_39] : memref<1x1x32xf32, #tpu.memory_space<vmem>>, vector<1x1x32xf32>
    %115 = vector.shape_cast %114 : vector<1x1x32xf32> to vector<1x32xf32>
    %c0_40 = arith.constant 0 : index
    %c0_41 = arith.constant 0 : index
    %c0_42 = arith.constant 0 : index
    %116 = vector.load %arg8[%c0_40, %c0_41, %c0_42] : memref<1x1x32xf32, #tpu.memory_space<vmem>>, vector<1x1x32xf32>
    %117 = vector.shape_cast %116 : vector<1x1x32xf32> to vector<1x32xf32>
    %cst_43 = arith.constant dense<0.000000e+00> : vector<16xf32>
    %118 = vector.multi_reduction <add>, %113, %cst_43 [1] : vector<16x32xf32> to vector<16xf32>
    %119 = vector.shape_cast %118 : vector<16xf32> to vector<16x1xf32>
    %cst_44 = arith.constant 3.200000e+01 : f32
    %120 = vector.broadcast %cst_44 : f32 to vector<16x1xf32>
    %121 = arith.divf %119, %120 : vector<16x1xf32>
    %122 = vector.broadcast %121 : vector<16x1xf32> to vector<16x32xf32>
    %123 = arith.subf %113, %122 : vector<16x32xf32>
    %124 = arith.mulf %123, %123 : vector<16x32xf32>
    %cst_45 = arith.constant dense<0.000000e+00> : vector<16xf32>
    %125 = vector.multi_reduction <add>, %124, %cst_45 [1] : vector<16x32xf32> to vector<16xf32>
    %126 = vector.shape_cast %125 : vector<16xf32> to vector<16x1xf32>
    %cst_46 = arith.constant 3.200000e+01 : f32
    %127 = vector.broadcast %cst_46 : f32 to vector<16x1xf32>
    %128 = arith.divf %126, %127 : vector<16x1xf32>
    %129 = vector.broadcast %121 : vector<16x1xf32> to vector<16x32xf32>
    %130 = arith.subf %113, %129 : vector<16x32xf32>
    %cst_47 = arith.constant 9.99999974E-6 : f32
    %131 = vector.broadcast %cst_47 : f32 to vector<16x1xf32>
    %132 = arith.addf %128, %131 : vector<16x1xf32>
    %133 = math.rsqrt %132 : vector<16x1xf32>
    %134 = vector.broadcast %133 : vector<16x1xf32> to vector<16x32xf32>
    %135 = arith.mulf %130, %134 : vector<16x32xf32>
    %136 = vector.broadcast %115 : vector<1x32xf32> to vector<16x32xf32>
    %137 = arith.mulf %135, %136 : vector<16x32xf32>
    %138 = vector.broadcast %117 : vector<1x32xf32> to vector<16x32xf32>
    %139 = arith.addf %137, %138 : vector<16x32xf32>
    %140 = arith.truncf %139 : vector<16x32xf32> to vector<16x32xbf16>
    %c0_48 = arith.constant 0 : index
    %c0_49 = arith.constant 0 : index
    %c0_50 = arith.constant 0 : index
    %141 = vector.load %arg9[%c0_48, %c0_49, %c0_50] : memref<1x32x64xbf16, #tpu.memory_space<vmem>>, vector<1x32x64xbf16>
    %142 = vector.shape_cast %141 : vector<1x32x64xbf16> to vector<32x64xbf16>
    %cst_51 = arith.constant dense<0.000000e+00> : vector<16x64xf32>
    %143 = tpu.matmul %140, %142, %cst_51 {dimension_numbers = #tpu.dot_dimension_numbers<[1], [0], [0], [1], [0, 0, 1, 1], [], []>} : vector<16x32xbf16>, vector<32x64xbf16>, vector<16x64xf32> -> vector<16x64xf32>
    %c0_52 = arith.constant 0 : index
    %c0_53 = arith.constant 0 : index
    %c0_54 = arith.constant 0 : index
    %144 = vector.load %arg10[%c0_52, %c0_53, %c0_54] : memref<1x1x64xf32, #tpu.memory_space<vmem>>, vector<1x1x64xf32>
    %145 = vector.shape_cast %144 : vector<1x1x64xf32> to vector<1x64xf32>
    %146 = vector.broadcast %145 : vector<1x64xf32> to vector<16x64xf32>
    %147 = arith.addf %143, %146 : vector<16x64xf32>
    %cst_55 = arith.constant 0.000000e+00 : f32
    %148 = vector.broadcast %cst_55 : f32 to vector<16x64xf32>
    %149 = arith.maximumf %147, %148 : vector<16x64xf32>
    %150 = arith.truncf %149 : vector<16x64xf32> to vector<16x64xbf16>
    %c0_56 = arith.constant 0 : index
    %c0_57 = arith.constant 0 : index
    %c0_58 = arith.constant 0 : index
    %151 = vector.load %arg11[%c0_56, %c0_57, %c0_58] : memref<1x64x32xbf16, #tpu.memory_space<vmem>>, vector<1x64x32xbf16>
    %152 = vector.shape_cast %151 : vector<1x64x32xbf16> to vector<64x32xbf16>
    %cst_59 = arith.constant dense<0.000000e+00> : vector<16x32xf32>
    %153 = tpu.matmul %150, %152, %cst_59 {dimension_numbers = #tpu.dot_dimension_numbers<[1], [0], [0], [1], [0, 0, 1, 1], [], []>} : vector<16x64xbf16>, vector<64x32xbf16>, vector<16x32xf32> -> vector<16x32xf32>
    %c0_60 = arith.constant 0 : index
    %c0_61 = arith.constant 0 : index
    %c0_62 = arith.constant 0 : index
    %154 = vector.load %arg12[%c0_60, %c0_61, %c0_62] : memref<1x1x32xf32, #tpu.memory_space<vmem>>, vector<1x1x32xf32>
    %155 = vector.shape_cast %154 : vector<1x1x32xf32> to vector<1x32xf32>
    %156 = vector.broadcast %155 : vector<1x32xf32> to vector<16x32xf32>
    %157 = arith.addf %153, %156 : vector<16x32xf32>
    %158 = arith.addf %139, %157 : vector<16x32xf32>
    %c0_63 = arith.constant 0 : index
    %c0_64 = arith.constant 0 : index
    %c0_65 = arith.constant 0 : index
    %159 = vector.load %arg13[%c0_63, %c0_64, %c0_65] : memref<1x1x32xf32, #tpu.memory_space<vmem>>, vector<1x1x32xf32>
    %160 = vector.shape_cast %159 : vector<1x1x32xf32> to vector<1x32xf32>
    %c0_66 = arith.constant 0 : index
    %c0_67 = arith.constant 0 : index
    %c0_68 = arith.constant 0 : index
    %161 = vector.load %arg14[%c0_66, %c0_67, %c0_68] : memref<1x1x32xf32, #tpu.memory_space<vmem>>, vector<1x1x32xf32>
    %162 = vector.shape_cast %161 : vector<1x1x32xf32> to vector<1x32xf32>
    %cst_69 = arith.constant dense<0.000000e+00> : vector<16xf32>
    %163 = vector.multi_reduction <add>, %158, %cst_69 [1] : vector<16x32xf32> to vector<16xf32>
    %164 = vector.shape_cast %163 : vector<16xf32> to vector<16x1xf32>
    %cst_70 = arith.constant 3.200000e+01 : f32
    %165 = vector.broadcast %cst_70 : f32 to vector<16x1xf32>
    %166 = arith.divf %164, %165 : vector<16x1xf32>
    %167 = vector.broadcast %166 : vector<16x1xf32> to vector<16x32xf32>
    %168 = arith.subf %158, %167 : vector<16x32xf32>
    %169 = arith.mulf %168, %168 : vector<16x32xf32>
    %cst_71 = arith.constant dense<0.000000e+00> : vector<16xf32>
    %170 = vector.multi_reduction <add>, %169, %cst_71 [1] : vector<16x32xf32> to vector<16xf32>
    %171 = vector.shape_cast %170 : vector<16xf32> to vector<16x1xf32>
    %cst_72 = arith.constant 3.200000e+01 : f32
    %172 = vector.broadcast %cst_72 : f32 to vector<16x1xf32>
    %173 = arith.divf %171, %172 : vector<16x1xf32>
    %174 = vector.broadcast %166 : vector<16x1xf32> to vector<16x32xf32>
    %175 = arith.subf %158, %174 : vector<16x32xf32>
    %cst_73 = arith.constant 9.99999974E-6 : f32
    %176 = vector.broadcast %cst_73 : f32 to vector<16x1xf32>
    %177 = arith.addf %173, %176 : vector<16x1xf32>
    %178 = math.rsqrt %177 : vector<16x1xf32>
    %179 = vector.broadcast %178 : vector<16x1xf32> to vector<16x32xf32>
    %180 = arith.mulf %175, %179 : vector<16x32xf32>
    %181 = vector.broadcast %160 : vector<1x32xf32> to vector<16x32xf32>
    %182 = arith.mulf %180, %181 : vector<16x32xf32>
    %183 = vector.broadcast %162 : vector<1x32xf32> to vector<16x32xf32>
    %184 = arith.addf %182, %183 : vector<16x32xf32>
    %c0_74 = arith.constant 0 : index
    %c0_75 = arith.constant 0 : index
    %185 = vector.load %arg16[%c0_74, %c0_75] : memref<16x32xf32, #tpu.memory_space<vmem>>, vector<16x32xf32>
    tpu.vector_store %arg16[%c0_74, %c0_75], %184 {strides = array<i32>} : memref<16x32xf32, #tpu.memory_space<vmem>>, vector<16x32xf32>,
    %c0_76 = arith.constant 0 : index
    %c0_77 = arith.constant 0 : index
    %186 = vector.load %arg15[%c0_76, %c0_77] : memref<16x32xf32, #tpu.memory_space<vmem>>, vector<16x32xf32>
    tpu.vector_store %arg15[%c0_76, %c0_77], %184 {strides = array<i32>} : memref<16x32xf32, #tpu.memory_space<vmem>>, vector<16x32xf32>,
    return
  }
  func.func @transform_0(%arg0: i32) -> (i32, i32) {
    %c0_i32 = arith.constant 0 : i32
    %c0_i32_0 = arith.constant 0 : i32
    %c0_i32_1 = arith.constant 0 : i32
    return %c0_i32, %c0_i32_0 : i32, i32
  }
  func.func @transform_1(%arg0: i32) -> (i32, i32) {
    %c0_i32 = arith.constant 0 : i32
    %c0_i32_0 = arith.constant 0 : i32
    %c0_i32_1 = arith.constant 0 : i32
    return %c0_i32, %c0_i32_0 : i32, i32
  }
  func.func @transform_2(%arg0: i32) -> (i32, i32, i32) {
    %c0_i32 = arith.constant 0 : i32
    %c0_i32_0 = arith.constant 0 : i32
    %c0_i32_1 = arith.constant 0 : i32
    return %arg0, %c0_i32, %c0_i32_0 : i32, i32, i32
  }
  func.func @transform_3(%arg0: i32) -> (i32, i32, i32) {
    %c0_i32 = arith.constant 0 : i32
    %c0_i32_0 = arith.constant 0 : i32
    %c0_i32_1 = arith.constant 0 : i32
    return %arg0, %c0_i32, %c0_i32_0 : i32, i32, i32
  }
  func.func @transform_4(%arg0: i32) -> (i32, i32, i32) {
    %c0_i32 = arith.constant 0 : i32
    %c0_i32_0 = arith.constant 0 : i32
    %c0_i32_1 = arith.constant 0 : i32
    return %arg0, %c0_i32, %c0_i32_0 : i32, i32, i32
  }
  func.func @transform_5(%arg0: i32) -> (i32, i32, i32) {
    %c0_i32 = arith.constant 0 : i32
    %c0_i32_0 = arith.constant 0 : i32
    %c0_i32_1 = arith.constant 0 : i32
    return %arg0, %c0_i32, %c0_i32_0 : i32, i32, i32
  }
  func.func @transform_6(%arg0: i32) -> (i32, i32, i32) {
    %c0_i32 = arith.constant 0 : i32
    %c0_i32_0 = arith.constant 0 : i32
    %c0_i32_1 = arith.constant 0 : i32
    return %arg0, %c0_i32, %c0_i32_0 : i32, i32, i32
  }
  func.func @transform_7(%arg0: i32) -> (i32, i32, i32) {
    %c0_i32 = arith.constant 0 : i32
    %c0_i32_0 = arith.constant 0 : i32
    %c0_i32_1 = arith.constant 0 : i32
    return %arg0, %c0_i32, %c0_i32_0 : i32, i32, i32
  }
  func.func @transform_8(%arg0: i32) -> (i32, i32, i32) {
    %c0_i32 = arith.constant 0 : i32
    %c0_i32_0 = arith.constant 0 : i32
    %c0_i32_1 = arith.constant 0 : i32
    return %arg0, %c0_i32, %c0_i32_0 : i32, i32, i32
  }
  func.func @transform_9(%arg0: i32) -> (i32, i32, i32) {
    %c0_i32 = arith.constant 0 : i32
    %c0_i32_0 = arith.constant 0 : i32
    %c0_i32_1 = arith.constant 0 : i32
    return %arg0, %c0_i32, %c0_i32_0 : i32, i32, i32
  }
  func.func @transform_10(%arg0: i32) -> (i32, i32, i32) {
    %c0_i32 = arith.constant 0 : i32
    %c0_i32_0 = arith.constant 0 : i32
    %c0_i32_1 = arith.constant 0 : i32
    return %arg0, %c0_i32, %c0_i32_0 : i32, i32, i32
  }
  func.func @transform_11(%arg0: i32) -> (i32, i32, i32) {
    %c0_i32 = arith.constant 0 : i32
    %c0_i32_0 = arith.constant 0 : i32
    %c0_i32_1 = arith.constant 0 : i32
    return %arg0, %c0_i32, %c0_i32_0 : i32, i32, i32
  }
  func.func @transform_12(%arg0: i32) -> (i32, i32, i32) {
    %c0_i32 = arith.constant 0 : i32
    %c0_i32_0 = arith.constant 0 : i32
    %c0_i32_1 = arith.constant 0 : i32
    return %arg0, %c0_i32, %c0_i32_0 : i32, i32, i32
  }
  func.func @transform_13(%arg0: i32) -> (i32, i32, i32) {
    %c0_i32 = arith.constant 0 : i32
    %c0_i32_0 = arith.constant 0 : i32
    %c0_i32_1 = arith.constant 0 : i32
    return %arg0, %c0_i32, %c0_i32_0 : i32, i32, i32
  }
  func.func @transform_14(%arg0: i32) -> (i32, i32) {
    %c0_i32 = arith.constant 0 : i32
    %c0_i32_0 = arith.constant 0 : i32
    %c0_i32_1 = arith.constant 0 : i32
    return %c0_i32, %c0_i32_0 : i32, i32
  }
}

</mosaic_0001>

<bundles_post_ra>
// kernel: transformer_forward.3
= control target key start
LH: loop header
LB: loop body
LE: loop exit
PB: predicated region body
PF: predicated region fallthrough
CT: control target
= control target key end

     0   :  { %8 = vsyncpa [#allocation3], 0  ;;  %s191_s15 = smov [#allocation2]   ;;  %s399_s0 = inlined_call_operand.vmem [shape: s32[16], index: 0, kind: input, shape index: {}]   ;;  %s400_s1 = inlined_call_operand.vmem [shape: f32[40,32], index: 1, kind: input, shape index: {}]   ;;  %s401_s2 = inlined_call_operand.vmem [shape: f32[8,32], index: 2, kind: input, shape index: {}]   ;;  %s402_s3 = inlined_call_operand.vmem [shape: f32[16,32], index: 3, kind: output, shape index: {}]  }
   0x1   :  { %s14_s14 = sshll.u32 %s399_s0, 4  ;;  %s15_s14 = int_to_ptr.vmem [resolvable:$true] %s14_s14 }
   0x2   :  { %17 = dma.vmem_to_smem %s15_s14, 16, %s191_s15, [#allocation3]  }
   0x3   :  { %189 = dma.done.wait [#allocation3], 16  }
   0x4   :  { %190 = vsyncadd [#allocation3], 4294967280 }
   0x5   :  { %26 = sfence }
   0x6   :  { %s27_s16 = sld [smem:[#allocation2]]  ;;  %v31_v0 = vld [vmem:[%s401_s2] sm:$0x1]  ;;  %vm33_vm0 = vcmask 253952   ;;  %v39_v1 = vld [vmem:[%s401_s2 + $0x1] sm:$0x1] }
   0x7   :  { %s161_s17 = sld [smem:[#allocation2 + $0x1]]  ;;  %v46_v3 = vld [vmem:[%s401_s2 + $0x2] sm:$0x1]  ;;  %v53_v6 = vld [vmem:[%s401_s2 + $0x3] sm:$0x1] }
   0x8   :  { %s162_s18 = sld [smem:[#allocation2 + $0x2]]  ;;  %v60_v9 = vld [vmem:[%s401_s2 + $0x4] sm:$0x1]  ;;  %v67_v13 = vld [vmem:[%s401_s2 + $0x5] sm:$0x1] }
   0x9   :  { %s163_s19 = sld [smem:[#allocation2 + $0x3]]  ;;  %v74_v17 = vld [vmem:[%s401_s2 + $0x6] sm:$0x1]  ;;  %v81_v21 = vld [vmem:[%s401_s2 + $0x7] sm:$0x1] }
   0xa   :  { %s215_s20 = sld [smem:[#allocation2 + $0x4]]  ;;  %v88_v25 = vld [vmem:[%s401_s2] sm:$0x1]  ;;  %v95_v29 = vld [vmem:[%s401_s2 + $0x1] sm:$0x1] }
   0xb   :  { %s220_s23 = sld [smem:[#allocation2 + $0x5]]  ;;  %v102_v33 = vld [vmem:[%s401_s2 + $0x2] sm:$0x1]  ;;  %v109_v37 = vld [vmem:[%s401_s2 + $0x3] sm:$0x1] }
   0xc   :  { %s28_s25 = scalar_lea.vmem %s400_s1, %s27_s16  ;;  %s228_s28 = sld [smem:[#allocation2 + $0x6]]  ;;  %v116_v49 = vld [vmem:[%s401_s2 + $0x4] sm:$0x1]  ;;  %v123_v52 = vld [vmem:[%s401_s2 + $0x5] sm:$0x1] }
   0xd   :  { %v29_v2 = vld [vmem:[%s28_s25] sm:$0x1]  ;;  %s36_s4 = scalar_lea.vmem %s400_s1, %s161_s17  ;;  %s236_s7 = sld [smem:[#allocation2 + $0x7]]  ;;  %v130_v55 = vld [vmem:[%s401_s2 + $0x6] sm:$0x1] }
   0xe   :  { %v30_v4 = vmul.f32 5.656854, %v29_v2  ;;  %v37_v5 = vld [vmem:[%s36_s4] sm:$0x1]  ;;  %s43_s10 = scalar_lea.vmem %s400_s1, %s162_s18  ;;  %s244_s13 = sld [smem:[#allocation2 + $0x8]] }
   0xf   :  { %v38_v7 = vmul.f32 5.656854, %v37_v5  ;;  %v44_v8 = vld [vmem:[%s43_s10] sm:$0x1]  ;;  %s50_s16 = scalar_lea.vmem %s400_s1, %s163_s19  ;;  %s252_s22 = sld [smem:[#allocation2 + $0x9]] }
  0x10   :  { %v32_v10 = vadd.f32 %v31_v0, %v30_v4  ;;  %v45_v11 = vmul.f32 5.656854, %v44_v8  ;;  %v51_v12 = vld [vmem:[%s50_s16] sm:$0x1]  ;;  %s57_s0 = scalar_lea.vmem %s400_s1, %s215_s20  ;;  %s261_s27 = sld [smem:[#allocation2 + $0xa]] }
  0x11   :  { %v40_v14 = vadd.f32 %v39_v1, %v38_v7  ;;  %v52_v15 = vmul.f32 5.656854, %v51_v12  ;;  %v58_v16 = vld [vmem:[%s57_s0] sm:$0x1]  ;;  %s64_s30 = scalar_lea.vmem %s400_s1, %s220_s23  ;;  %s270_s6 = sld [smem:[#allocation2 + $0xb]] }
  0x12   :  { %34 = vst.msk [vmem:[%s402_s3] sm:$0x1] %vm33_vm0, %v32_v10  ;;  %v47_v18 = vadd.f32 %v46_v3, %v45_v11  ;;  %v59_v19 = vmul.f32 5.656854, %v58_v16  ;;  %v65_v20 = vld [vmem:[%s64_s30] sm:$0x1]  ;;  %s71_s11 = scalar_lea.vmem %s400_s1, %s228_s28 }
  0x13   :  { %41 = vst.msk [vmem:[%s402_s3 + $0x1] sm:$0x1] %vm33_vm0, %v40_v14  ;;  %v54_v22 = vadd.f32 %v53_v6, %v52_v15  ;;  %v66_v23 = vmul.f32 5.656854, %v65_v20  ;;  %v72_v24 = vld [vmem:[%s71_s11] sm:$0x1]  ;;  %s78_s21 = scalar_lea.vmem %s400_s1, %s236_s7 }
  0x14   :  { %48 = vst.msk [vmem:[%s402_s3 + $0x2] sm:$0x1] %vm33_vm0, %v47_v18  ;;  %v61_v26 = vadd.f32 %v60_v9, %v59_v19  ;;  %v73_v27 = vmul.f32 5.656854, %v72_v24  ;;  %v79_v28 = vld [vmem:[%s78_s21] sm:$0x1]  ;;  %s85_s19 = scalar_lea.vmem %s400_s1, %s244_s13 }
  0x15   :  { %55 = vst.msk [vmem:[%s402_s3 + $0x3] sm:$0x1] %vm33_vm0, %v54_v22  ;;  %v68_v30 = vadd.f32 %v67_v13, %v66_v23  ;;  %v80_v31 = vmul.f32 5.656854, %v79_v28  ;;  %v86_v32 = vld [vmem:[%s85_s19] sm:$0x1]  ;;  %s92_s8 = scalar_lea.vmem %s400_s1, %s252_s22 }
  0x16   :  { %62 = vst.msk [vmem:[%s402_s3 + $0x4] sm:$0x1] %vm33_vm0, %v61_v26  ;;  %v75_v34 = vadd.f32 %v74_v17, %v73_v27  ;;  %v87_v35 = vmul.f32 5.656854, %v86_v32  ;;  %v93_v36 = vld [vmem:[%s92_s8] sm:$0x1]  ;;  %s99_s14 = scalar_lea.vmem %s400_s1, %s261_s27 }
  0x17   :  { %69 = vst.msk [vmem:[%s402_s3 + $0x5] sm:$0x1] %vm33_vm0, %v68_v30  ;;  %v82_v38 = vadd.f32 %v81_v21, %v80_v31  ;;  %v94_v39 = vmul.f32 5.656854, %v93_v36  ;;  %v100_v40 = vld [vmem:[%s99_s14] sm:$0x1]  ;;  %s106_s24 = scalar_lea.vmem %s400_s1, %s270_s6 }
  0x18   :  { %76 = vst.msk [vmem:[%s402_s3 + $0x6] sm:$0x1] %vm33_vm0, %v75_v34  ;;  %v89_v41 = vadd.f32 %v88_v25, %v87_v35  ;;  %v101_v42 = vmul.f32 5.656854, %v100_v40  ;;  %v107_v43 = vld [vmem:[%s106_s24] sm:$0x1] }
  0x19   :  { %83 = vst.msk [vmem:[%s402_s3 + $0x7] sm:$0x1] %vm33_vm0, %v82_v38  ;;  %v96_v44 = vadd.f32 %v95_v29, %v94_v39  ;;  %v108_v45 = vmul.f32 5.656854, %v107_v43  ;;  %s172_s26 = sld [smem:[#allocation2 + $0xc]] }
  0x1a   :  { %90 = vst.msk [vmem:[%s402_s3 + $0x8] sm:$0x1] %vm33_vm0, %v89_v41  ;;  %v103_v46 = vadd.f32 %v102_v33, %v101_v42  ;;  %s173_s6 = sld [smem:[#allocation2 + $0xd]]  ;;  %v137_v59 = vld [vmem:[%s401_s2 + $0x7] sm:$0x1] }
  0x1b   :  { %97 = vst.msk [vmem:[%s402_s3 + $0x9] sm:$0x1] %vm33_vm0, %v96_v44  ;;  %v110_v47 = vadd.f32 %v109_v37, %v108_v45  ;;  %s174_s4 = sld [smem:[#allocation2 + $0xe]] }
  0x1c   :  { %104 = vst.msk [vmem:[%s402_s3 + $0xa] sm:$0x1] %vm33_vm0, %v103_v46  ;;  %s175_s8 = sld [smem:[#allocation2 + $0xf]] }
  0x1d   :  { %111 = vst.msk [vmem:[%s402_s3 + $0xb] sm:$0x1] %vm33_vm0, %v110_v47 }
  0x1f   :  { %s113_s23 = scalar_lea.vmem %s400_s1, %s172_s26 }
  0x20   :  { %v114_v48 = vld [vmem:[%s113_s23] sm:$0x1]  ;;  %s120_s22 = scalar_lea.vmem %s400_s1, %s173_s6 }
  0x21   :  { %v115_v50 = vmul.f32 5.656854, %v114_v48  ;;  %v121_v51 = vld [vmem:[%s120_s22] sm:$0x1]  ;;  %s127_s28 = scalar_lea.vmem %s400_s1, %s174_s4 }
  0x22   :  { %v122_v53 = vmul.f32 5.656854, %v121_v51  ;;  %v128_v54 = vld [vmem:[%s127_s28] sm:$0x1]  ;;  %s134_s19 = scalar_lea.vmem %s400_s1, %s175_s8 }
  0x23   :  { %v117_v56 = vadd.f32 %v116_v49, %v115_v50  ;;  %v129_v57 = vmul.f32 5.656854, %v128_v54  ;;  %v135_v58 = vld [vmem:[%s134_s19] sm:$0x1] }
  0x24   :  { %v124_v60 = vadd.f32 %v123_v52, %v122_v53  ;;  %v136_v61 = vmul.f32 5.656854, %v135_v58 }
  0x25   :  { %118 = vst.msk [vmem:[%s402_s3 + $0xc] sm:$0x1] %vm33_vm0, %v117_v56  ;;  %v131_v62 = vadd.f32 %v130_v55, %v129_v57 }
  0x26   :  { %125 = vst.msk [vmem:[%s402_s3 + $0xd] sm:$0x1] %vm33_vm0, %v124_v60  ;;  %v138_v63 = vadd.f32 %v137_v59, %v136_v61 }
  0x27   :  { %132 = vst.msk [vmem:[%s402_s3 + $0xe] sm:$0x1] %vm33_vm0, %v131_v62 }
  0x28   :  { %139 = vst.msk [vmem:[%s402_s3 + $0xf] sm:$0x1] %vm33_vm0, %v138_v63 }
  0x29   :  { %144 = vsyncpa [#allocation3], 1 }

// kernel: transformer_forward.5
= control target key start
LH: loop header
LB: loop body
LE: loop exit
PB: predicated region body
PF: predicated region fallthrough
CT: control target
= control target key end

     0   :  { %vm38_vm0 = vcmask 261120   ;;  %s115_s1 = inlined_call_operand.vmem [shape: bf16[32,128], index: 1, kind: input, shape index: {}]   ;;  %s116_s0 = inlined_call_operand.vmem [shape: f32[16,32], index: 0, kind: input, shape index: {}]   ;;  %s117_s2 = inlined_call_operand.vmem [shape: f32[1,128], index: 2, kind: input, shape index: {}]   ;;  %s118_s3 = inlined_call_operand.vmem [shape: f32[16,128], index: 3, kind: output, shape index: {}]  }
   0x1   :  { %v72_v0 = vld [vmem:[%s115_s1 + $0x8] sm:$0xff]  ;;  %v71_v1 = vld [vmem:[%s115_s1] sm:$0xff] }
   0x2   :  { %48 = vmatpush.bf16.msra.mxu0 %v72_v0  ;;  %v15_v2 = vld [vmem:[%s116_s0] sm:$0xff]  ;;  %v16_v3 = vld [vmem:[%s116_s0 + $0x8] sm:$0xff] }
   0x3   :  { %v17_v4 = vpack.c.bf16 %v16_v3, %v15_v2  ;;  %v73_v5 = vld [vmem:[%s117_s2] ss:$0 sm:$0xff] }
   0x6   :  { %49 = vmatpush.bf16.msra.mxu0 %v71_v1 }
   0x9   :  { %70 = vmatmul.msk.bf16.vlgmr.msra.gmra.mxu0 %vm38_vm0, %v17_v4 }
  0x86   :  { %v51_v6 = vpop.f32.mrf.mxu0 }
  0x87   :  { %v52_v7 = vadd.f32 %v73_v5, %v51_v6 }
  0x89   :  { %56 = vst [vmem:[%s118_s3] sm:$0xff] %v52_v7 }
  0x8e   :  { %v53_v8 = vpop.f32.mrf.mxu0 }
  0x8f   :  { %v54_v9 = vadd.f32 %v73_v5, %v53_v8 }
  0x91   :  { %57 = vst [vmem:[%s118_s3 + $0x8] sm:$0xff] %v54_v9 }

// kernel: transformer_forward.4
= control target key start
LH: loop header
LB: loop body
LE: loop exit
PB: predicated region body
PF: predicated region fallthrough
CT: control target
= control target key end

     0   :  { %s1850_s29 = smov 0   ;;  %s2106_s0 = inlined_call_operand.vmem [shape: f32[16,32], index: 0, kind: input, shape index: {}]   ;;  %s2107_s1 = inlined_call_operand.vmem [shape: f32[8,8], index: 1, kind: input, shape index: {}]   ;;  %s2108_s2 = inlined_call_operand.vmem [shape: bf16[2,32,96], index: 2, kind: input, shape index: {}]   ;;  %s2109_s3 = inlined_call_operand.vmem [shape: f32[2,1,96], index: 3, kind: input, shape index: {}]   ;;  %s2110_s4 = inlined_call_operand.vmem [shape: bf16[2,32,32], index: 4, kind: input, shape index: {}]   ;;  %s2111_s5 = inlined_call_operand.vmem [shape: f32[2,1,32], index: 5, kind: input, shape index: {}]   ;;  %s2112_s6 = inlined_call_operand.vmem [shape: f32[2,1,32], index: 6, kind: input, shape index: {}]   ;;  %s2113_s7 = inlined_call_operand.vmem [shape: f32[2,1,32], index: 7, kind: input, shape index: {}]   ;;  %s2114_s8 = inlined_call_operand.vmem [shape: bf16[2,32,64], index: 8, kind: input, shape index: {}]   ;;  %s2115_s9 = inlined_call_operand.vmem [shape: f32[2,1,64], index: 9, kind: input, shape index: {}]   ;;  %s2116_s10 = inlined_call_operand.vmem [shape: bf16[2,64,32], index: 10, kind: input, shape index: {}]   ;;  %s2117_s11 = inlined_call_operand.vmem [shape: f32[2,1,32], index: 11, kind: input, shape index: {}]   ;;  %s2118_s12 = inlined_call_operand.vmem [shape: f32[2,1,32], index: 12, kind: input, shape index: {}]   ;;  %s2119_s13 = inlined_call_operand.vmem [shape: f32[2,1,32], index: 13, kind: input, shape index: {}]   ;;  %s2120_s14 = inlined_call_operand.vmem [shape: f32[16,32], index: 14, kind: output, shape index: {}]  }
   0x1   :  { %2124 = sst [smem:[#allocation4_spill]] %s2106_s0 }
   0x2   :  { %2125 = sst [smem:[#allocation5_spill]] %s2107_s1 }
   0x3   :  { %2126 = sst [smem:[#allocation6_spill]] %s2108_s2 }
   0x4   :  { %2127 = sst [smem:[#allocation7_spill]] %s2109_s3 }
   0x5   :  { %2128 = sst [smem:[#allocation8_spill]] %s2110_s4 }
   0x6   :  { %2129 = sst [smem:[#allocation9_spill]] %s2120_s14 }
   0x7 LB: > { %2130 = sst [smem:[#allocation3_spill]] %s1758_s29  ;;  %s1575_s30 = sadd.s32 4294967295, %s1758_s29   ;;  %s1758_s29 = sphi %s1850_s29, %s24_s29  }
   0x8   : > { %p1578_p0 = scmp.ge.s32.totalorder %s1758_s29, 1  ;;  %p501_p1 = scmp.lt.s32.totalorder %s1758_s29, 3 }
   0xa   : > { %p502_p2 = pnand %p1578_p0, %p501_p1 }
   0xb   : > { %p581_p3 = scmp.lt.s32.totalorder (!%p502_p2), %s1575_s30, 1  ;;  %s2131_s3 = sld [smem:[#allocation7_spill]] (!%p502_p2) }
   0xc   : > { %505 = sbr.rel (%p502_p2) target bundleno = 2000 (0x7d0), region = 76  ;;  %s2132_s2 = sld [smem:[#allocation6_spill]] (!%p502_p2) }
   0xd   : > { %s2133_s4 = sld [smem:[#allocation8_spill]] (!%p502_p2)  ;;  %p1587_p4 = scmp.ne.s32.totalorder (!%p502_p2), %s1575_s30, 0 }
  0x11   : > { %s1858_s15 = scalar_select %p581_p3, %s1575_s30, 1 }
  0x13   : > { %s1650_s16 = sshll.u32 %s1858_s15, 4  ;;  %s588_s19 = scalar_lea.vmem %s2131_s3, %s1858_s15 }
  0x14   : > { %s585_s22 = scalar_lea.vmem %s2132_s2, %s1650_s16  ;;  %s1871_s25 = scalar_lea.vmem %s2133_s4, %s1650_s16 }
  0x15   : > { %s1888_s21 = scalar_lea.vmem %s2114_s8, %s1650_s16  ;;  %s1653_s4 = sshll.u32 %s1858_s15, 5 }
  0x16   : > { %s1898_s28 = scalar_lea.vmem %s2116_s10, %s1653_s4  ;;  %s618_s0 = scalar_lea.vmem %s2117_s11, %s1858_s15 }
  0x17   : > { %s621_s3 = scalar_lea.vmem %s2118_s12, %s1858_s15  ;;  %s624_s1 = scalar_lea.vmem %s2119_s13, %s1858_s15 }
  0x18   : > { %629 = sbr.rel (%p1587_p4) target bundleno = 33 (0x21), region = 80  ;;  %s2134_s2 = sld [smem:[#allocation4_spill]] (!%p1587_p4) }
  0x1d   : > { %vm632_vm0 = vcmask 261120  }
  0x1e   : > { %v630_v0 = vld [vmem:[%s2134_s2] sm:$0xff]  ;;  %v631_v1 = vld [vmem:[%s2134_s2 + $0x8] sm:$0xff] }
  0x1f   : > { %633 = vst.msk [vmem:[#allocation2] sm:$0xff] %vm632_vm0, %v630_v0 }
  0x20   : > { %634 = vst.msk [vmem:[#allocation2 + $0x8] sm:$0xff] %vm632_vm0, %v631_v1 }
  0x21 PF: > { %v1655_v2 = vld [vmem:[%s585_s22 + $0x8] sm:$0xff]  ;;  %v1654_v3 = vld [vmem:[%s585_s22] sm:$0xff]  ;;  %vm658_vm1 = vcmask 261120   ;;  %s1760_s30 = smov 120   ;;  %s1761_s22 = smov 88   ;;  %vm684_vm2 = vcmask 64512  }
  0x22   : > { %668 = vmatpush.bf16.msra.mxu0 %v1655_v2  ;;  %v1702_v7 = vld [vmem:[%s588_s19] ss:$0 sm:$0xff]  ;;  %s1762_s18 = smov 96   ;;  %s1763_s19 = smov 112   ;;  %vm761_vm3 = vcmask 1043456   ;;  %vm1173_vm4 = vcmask 130048  }
  0x23   : > { %s1764_s27 = smov 80   ;;  %s1765_s14 = smov 72   ;;  %vm1176_vm5 = vcmask 195584   ;;  %vm1359_vm13 = vcmask 523264  }
  0x24   : > { %s1766_s29 = smov 104   ;;  %s2135_s20 = sld [smem:[#allocation5_spill]] }
  0x25   : > { %s1767_s23 = smov 64   ;;  %s1768_s24 = smov 56  }
  0x26   : > { %v1918_v4 = vld [vmem:[#allocation2] sm:$0xff]  ;;  %669 = vmatpush.bf16.msra.mxu0 %v1654_v3  ;;  %s1769_s4 = smov 48   ;;  %s1770_s26 = smov 40  }
  0x27   : > { %v1920_v5 = vld [vmem:[#allocation2 + $0x8] sm:$0xff] }
  0x28   : > { %v637_v6 = vpack.c.bf16 %v1920_v5, %v1918_v4 }
  0x2a   : > { %1596 = vmatmul.msk.bf16.vlgmr.msra.gmra.mxu0 %vm658_vm1, %v637_v6  ;;  %v678_v41 = vld [vmem:[%s2135_s20] sm:$0xff]  ;;  %s2138_s20 = scalar_lea.vmem %s2113_s7, %s1858_s15 }
  0xa7   : > { %v671_v8 = vpop.f32.mrf.mxu0 }
  0xa8   : > { %v672_v9 = vadd.f32 %v1702_v7, %v671_v8 }
  0xaa   : > { %v676_v10 = vpack.c.bf16 %v672_v9, %v672_v9 }
  0xac   : > { %v680_v11 = vunpack.c.l.b16 %v676_v10 }
  0xae   : > { %v1925_v12 = vpack.c.b16 %v680_v11, %v680_v11 }
  0xaf   : > { %v673_v13 = vpop.f32.mrf.mxu0 }
  0xb0   : > { %v674_v14 = vadd.f32 %v1702_v7, %v673_v13  ;;  %799 = vrot.lane.b32.xlu2 %v1925_v12, %s1760_s30  ;;  %801 = vrot.lane.b32.xlu1 %v1925_v12, %s1761_s22 }
  0xb1   : > { %682 = vrot.lane.b32.xlu0 %v1925_v12, %s1762_s18 }
  0xb2   : > { %v677_v15 = vpack.c.bf16 %v674_v14, %v674_v14 }
  0xb4   : > { %v705_v16 = vunpack.c.l.b16 %v677_v15 }
  0xb6   : > { %v1930_v17 = vpack.c.b16 %v705_v16, %v705_v16 }
  0xb8   : > { %822 = vrot.lane.b32.xlu2 %v1930_v17, %s1760_s30  ;;  %824 = vrot.lane.b32.xlu1 %v1930_v17, %s1761_s22  ;;  %s1771_s30 = smov 8   ;;  %s1772_s22 = smov 16  }
  0xb9   : > { %707 = vrot.lane.b32.xlu0 %v1930_v17, %s1762_s18  ;;  %s1773_s18 = smov 24  }
  0xc0   : > { %915 = vrot.lane.b32.xlu2 %v1925_v12, %s1763_s19  ;;  %940 = vrot.lane.b32.xlu1 %v1930_v17, %s1764_s27 }
  0xc1   : > { %917 = vrot.lane.b32.xlu0 %v1925_v12, %s1764_s27  ;;  %s2136_s27 = scalar_lea.vmem %s2111_s5, %s1858_s15 }
  0xc8   : > { %1056 = vrot.lane.b32.xlu2 %v1930_v17, %s1765_s14  ;;  %1033 = vrot.lane.b32.xlu1 %v1925_v12, %s1765_s14 }
  0xc9   : > { %938 = vrot.lane.b32.xlu0 %v1930_v17, %s1763_s19  ;;  %s2140_s19 = sld [smem:[#allocation9_spill]] }
  0xd0   : > { %1054 = vrot.lane.b32.xlu1 %v1930_v17, %s1766_s29 }
  0xd1   : > { %1031 = vrot.lane.b32.xlu0 %v1925_v12, %s1766_s29  ;;  %s2137_s29 = scalar_lea.vmem %s2112_s6, %s1858_s15 }
 0x10a   : > { %v800_v18 = vpop.permute.xlu2 %799 }
 0x112   : > { %v823_v23 = vpop.permute.xlu2 %822 }
 0x11a   : > { %v916_v28 = vpop.permute.xlu2 %915 }
 0x122   : > { %v802_v19 = vpop.permute.xlu1 %801  ;;  %v1057_v33 = vpop.permute.xlu2 %1056 }
 0x123   : > { %v683_v20 = vpop.permute.xlu0 %682  ;;  %v807_v21 = vsel %vm684_vm2, %v802_v19, 0  ;;  %v1062_v36 = vsel %vm684_vm2, %v1057_v33, 0 }
 0x124   : > { %v689_v22 = vsel %vm684_vm2, %v683_v20, 0  ;;  %816 = vmatpush.bf16.xpose.msrb.mxu0 %v807_v21 }
 0x125   : > { %698 = vmatpush.bf16.xpose.msra.mxu1 %v689_v22 }
 0x12a   : > { %v825_v24 = vpop.permute.xlu1 %824 }
 0x12b   : > { %v708_v25 = vpop.permute.xlu0 %707  ;;  %1601 = vmatmul.msk.bf16.vlgmr.msrb.gmra.mxu0 %vm684_vm2, %v800_v18  ;;  %v830_v26 = vsel %vm684_vm2, %v825_v24, 0 }
 0x12c   : > { %1597 = vmatmul.msk.bf16.vlgmr.msra.gmra.mxu1 %vm684_vm2, %v676_v10  ;;  %v713_v27 = vsel %vm684_vm2, %v708_v25, 0 }
 0x12d   : > { %722 = vmatpush.bf16.xpose.msra.mxu2 %v713_v27  ;;  %839 = vmatpush.bf16.xpose.msrb.mxu1 %v830_v26 }
 0x132   : > { %v941_v29 = vpop.permute.xlu1 %940 }
 0x133   : > { %v946_v30 = vsel %vm684_vm2, %v941_v29, 0  ;;  %v918_v31 = vpop.permute.xlu0 %917 }
 0x134   : > { %v923_v32 = vsel %vm684_vm2, %v918_v31, 0  ;;  %1598 = vmatmul.msk.bf16.vlgmr.msra.gmra.mxu2 %vm684_vm2, %v677_v15 }
 0x135   : > { %955 = vmatpush.bf16.xpose.msra.mxu1 %v946_v30  ;;  %932 = vmatpush.bf16.xpose.msra.mxu0 %v923_v32 }
 0x13a   : > { %v1034_v34 = vpop.permute.xlu1 %1033 }
 0x13b   : > { %v1039_v35 = vsel %vm684_vm2, %v1034_v34, 0  ;;  %v939_v37 = vpop.permute.xlu0 %938 }
 0x13c   : > { %1602 = vmatmul.msk.bf16.vlgmr.msrb.gmra.mxu1 %vm684_vm2, %v823_v23  ;;  %1605 = vmatmul.msk.bf16.vlgmr.msra.gmra.mxu0 %vm684_vm2, %v916_v28 }
 0x13d   : > { %1071 = vmatpush.bf16.xpose.msrb.mxu1 %v1062_v36  ;;  %1048 = vmatpush.bf16.xpose.msrb.mxu0 %v1039_v35 }
 0x142   : > { %v1055_v39 = vpop.permute.xlu1 %1054 }
 0x143   : > { %v1032_v38 = vpop.permute.xlu0 %1031 }
 0x14c   : > { %1606 = vmatmul.msk.bf16.vlgmr.msra.gmra.mxu1 %vm684_vm2, %v939_v37  ;;  %1609 = vmatmul.msk.bf16.vlgmr.msrb.gmra.mxu0 %vm684_vm2, %v1032_v38 }
 0x15c   : > { %1610 = vmatmul.msk.bf16.vlgmr.msrb.gmra.mxu1 %vm684_vm2, %v1055_v39 }
 0x1a8   : > { %v818_v40 = vpop.f32.mrf.mxu0 }
 0x1a9   : > { %v700_v42 = vpop.f32.mrf.mxu1  ;;  %v845_v43 = vmul.f32 0.35355338, %v818_v40 }
 0x1aa   : > { %v728_v44 = vmul.f32 0.35355338, %v700_v42 }
 0x1ab   : > { %v847_v45 = vadd.f32 %v845_v43, %v678_v41 }
 0x1ac   : > { %v730_v46 = vadd.f32 %v728_v44, %v678_v41 }
 0x1ad   : > { %v849_v47 = vsel %vm684_vm2, %v847_v45, -inf }
 0x1ae   : > { %850 = vmax.xlane.f32.xlu1 %v849_v47  ;;  %v732_v48 = vsel %vm684_vm2, %v730_v46, -inf }
 0x1af   : > { %733 = vmax.xlane.f32.xlu2 %v732_v48 }
 0x1b0   : > { %v820_v49 = vpop.f32.mrf.mxu0 }
 0x1b1   : > { %v702_v50 = vpop.f32.mrf.mxu1 }
 0x1b7   : > { %v724_v51 = vpop.f32.mrf.mxu2 }
 0x1b8   : > { %v729_v52 = vmul.f32 0.35355338, %v724_v51 }
 0x1b9   : > { %v841_v53 = vpop.f32.mrf.mxu1  ;;  %v934_v54 = vpop.f32.mrf.mxu0 }
 0x1ba   : > { %v846_v55 = vmul.f32 0.35355338, %v841_v53  ;;  %v961_v56 = vmul.f32 0.35355338, %v934_v54  ;;  %v731_v57 = vadd.f32 %v729_v52, %v678_v41 }
 0x1bc   : > { %v735_v58 = vsel %vm684_vm2, %v731_v57, -inf  ;;  %v848_v59 = vadd.f32 %v846_v55, %v678_v41  ;;  %v1965_v60 = vadd.f32 %v961_v56, %v678_v41 }
 0x1bd   : > { %736 = vmax.xlane.f32.xlu0 %v735_v58 }
 0x1be   : > { %v852_v61 = vsel %vm684_vm2, %v848_v59, -inf  ;;  %v965_v19 = vsel %vm684_vm2, %v1965_v60, -inf }
 0x1bf   : > { %853 = vmax.xlane.f32.xlu2 %v852_v61  ;;  %v726_v62 = vpop.f32.mrf.mxu2 }
 0x1c1   : > { %v843_v63 = vpop.f32.mrf.mxu1  ;;  %v936_v0 = vpop.f32.mrf.mxu0 }
 0x1c7   : > { %778 = vrot.lane.b32.xlu1 %v1930_v17, %s1767_s23 }
 0x1c9   : > { %v957_v1 = vpop.f32.mrf.mxu1  ;;  %v1050_v2 = vpop.f32.mrf.mxu0 }
 0x1ca   : > { %v962_v10 = vmul.f32 0.35355338, %v957_v1  ;;  %v1077_v15 = vmul.f32 0.35355338, %v1050_v2 }
 0x1cc   : > { %v964_v13 = vadd.f32 %v962_v10, %v678_v41  ;;  %v1079_v18 = vadd.f32 %v1077_v15, %v678_v41 }
 0x1ce   : > { %v968_v16 = vsel %vm684_vm2, %v964_v13, -inf  ;;  %v1081_v20 = vsel %vm684_vm2, %v1079_v18, -inf }
 0x1cf   : > { %894 = vrot.lane.b32.xlu1 %v1930_v17, %s1768_s24 }
 0x1d1   : > { %873 = vrot.lane.b32.xlu0 %v1925_v12, %s1768_s24  ;;  %v959_v3 = vpop.f32.mrf.mxu1  ;;  %v1052_v6 = vpop.f32.mrf.mxu0 }
 0x1d7   : > { %756 = vrot.lane.b32.xlu2 %v1925_v12, %s1767_s23 }
 0x1d9   : > { %v1073_v7 = vpop.f32.mrf.mxu1 }
 0x1da   : > { %v1078_v9 = vmul.f32 0.35355338, %v1073_v7 }
 0x1dc   : > { %v1080_v11 = vadd.f32 %v1078_v9, %v678_v41 }
 0x1de   : > { %v1084_v14 = vsel %vm684_vm2, %v1080_v11, -inf }
 0x1e1   : > { %v1075_v8 = vpop.f32.mrf.mxu1 }
 0x1f9   : > { %1085 = vmax.xlane.f32.xlu1 %v1084_v14 }
 0x1fb   : > { %969 = vmax.xlane.f32.xlu0 %v968_v16 }
 0x200   : > { %966 = vmax.xlane.f32.xlu2 %v965_v19 }
 0x203   : > { %1082 = vmax.xlane.f32.xlu0 %v1081_v20 }
 0x221   : > { %v851_v21 = vpop.xlane.xlu1 %850 }
 0x222   : > { %v855_v22 = vsub.f32 %v847_v45, %v851_v21  ;;  %v734_v23 = vpop.xlane.xlu2 %733 }
 0x223   : > { %v738_v24 = vsub.f32 %v730_v46, %v734_v23 }
 0x224   : > { %v857_v25 = vmul.f32 1.442695, %v855_v22 }
 0x225   : > { %v740_v26 = vmul.f32 1.442695, %v738_v24 }
 0x226   : > { %1710 = vpow2.f32 %v857_v25 }
 0x227   : > { %1712 = vpow2.f32 %v740_v26 }
 0x22c   : > { %v1977_v27 = vpop.eup %1710 }
 0x22d   : > { %v1979_v28 = vpop.eup %1712  ;;  %v861_v29 = vsel %vm684_vm2, %v1977_v27, 0.0 }
 0x22e   : > { %v744_v30 = vsel %vm684_vm2, %v1979_v28, 0.0  ;;  %862 = vadd.xlane.f32.xlu0 %v861_v29 }
 0x22f   : > { %745 = vadd.xlane.f32.xlu1 %v744_v30 }
 0x230   : > { %v737_v31 = vpop.xlane.xlu0 %736 }
 0x231   : > { %v739_v32 = vsub.f32 %v731_v57, %v737_v31 }
 0x232   : > { %v854_v33 = vpop.xlane.xlu2 %853 }
 0x233   : > { %v742_v34 = vmul.f32 1.442695, %v739_v32  ;;  %v856_v35 = vsub.f32 %v848_v59, %v854_v33 }
 0x235   : > { %1714 = vpow2.f32 %v742_v34  ;;  %v859_v36 = vmul.f32 1.442695, %v856_v35 }
 0x237   : > { %1716 = vpow2.f32 %v859_v36 }
 0x239   : > { %v779_v37 = vpop.permute.xlu1 %778 }
 0x23a   : > { %v757_v38 = vpop.permute.xlu2 %756  ;;  %v784_v39 = vsel %vm761_vm3, %v779_v37, 0 }
 0x23b   : > { %v1986_v40 = vpop.eup %1714  ;;  %v763_v41 = vsel %vm761_vm3, %v757_v38, 0 }
 0x23c   : > { %772 = vmatpush.bf16.msra.mxu3 %v763_v41  ;;  %v747_v42 = vsel %vm684_vm2, %v1986_v40, 0.0 }
 0x23d   : > { %v1991_v43 = vpop.eup %1716  ;;  %748 = vadd.xlane.f32.xlu0 %v747_v42 }
 0x23e   : > { %v864_v44 = vsel %vm684_vm2, %v1991_v43, 0.0 }
 0x23f   : > { %865 = vadd.xlane.f32.xlu2 %v864_v44 }
 0x240   : > { %793 = vmatpush.bf16.msrb.mxu3 %v784_v39 }
 0x241   : > { %v895_v47 = vpop.permute.xlu1 %894 }
 0x242   : > { %v900_v15 = vsel %vm761_vm3, %v895_v47, 0 }
 0x243   : > { %v874_v45 = vpop.permute.xlu0 %873 }
 0x244   : > { %v879_v46 = vsel %vm761_vm3, %v874_v45, 0 }
 0x245   : > { %888 = vmatpush.bf16.msrb.mxu2 %v879_v46 }
 0x248   : > { %1010 = vrot.lane.b32.xlu1 %v1930_v17, %s1769_s4 }
 0x257   : > { %989 = vrot.lane.b32.xlu2 %v1925_v12, %s1769_s4  ;;  %s2139_s4 = scalar_lea.vmem %s2115_s9, %s1858_s15 }
 0x26c   : > { %v1086_v48 = vpop.xlane.xlu1 %1085 }
 0x26d   : > { %v1088_v49 = vsub.f32 %v1080_v11, %v1086_v48 }
 0x26e   : > { %v970_v50 = vpop.xlane.xlu0 %969 }
 0x26f   : > { %v972_v51 = vsub.f32 %v964_v13, %v970_v50  ;;  %v1091_v53 = vmul.f32 1.442695, %v1088_v49 }
 0x271   : > { %v975_v52 = vmul.f32 1.442695, %v972_v51 }
 0x273   : > { %1718 = vpow2.f32 %v975_v52  ;;  %v967_v54 = vpop.xlane.xlu2 %966 }
 0x274   : > { %v971_v55 = vsub.f32 %v1965_v60, %v967_v54  ;;  %1720 = vpow2.f32 %v1091_v53 }
 0x276   : > { %v973_v56 = vmul.f32 1.442695, %v971_v55  ;;  %v1083_v57 = vpop.xlane.xlu0 %1082 }
 0x277   : > { %v1087_v58 = vsub.f32 %v1079_v18, %v1083_v57 }
 0x278   : > { %1722 = vpow2.f32 %v973_v56 }
 0x279   : > { %v1719_v59 = vpop.eup %1718  ;;  %v1089_v61 = vmul.f32 1.442695, %v1087_v58 }
 0x27a   : > { %v980_v62 = vsel %vm684_vm2, %v1719_v59, 0.0  ;;  %v2000_v63 = vpop.eup %1720 }
 0x27b   : > { %1724 = vpow2.f32 %v1089_v61  ;;  %981 = vadd.xlane.f32.xlu0 %v980_v62  ;;  %v1096_v2 = vsel %vm684_vm2, %v2000_v63, 0.0 }
 0x27e   : > { %v1723_v0 = vpop.eup %1722 }
 0x27f   : > { %v977_v1 = vsel %vm684_vm2, %v1723_v0, 0.0 }
 0x280   : > { %978 = vadd.xlane.f32.xlu1 %v977_v1  ;;  %1097 = vadd.xlane.f32.xlu2 %v1096_v2 }
 0x281   : > { %v1725_v60 = vpop.eup %1724 }
 0x282   : > { %v1093_v3 = vsel %vm684_vm2, %v1725_v60, 0.0 }
 0x283   : > { %1094 = vadd.xlane.f32.xlu0 %v1093_v3  ;;  %v1656_v3 = vld [vmem:[%s1871_s25] sm:$0xff] }
 0x297   : > { %1105 = vrot.lane.b32.xlu0 %v1925_v12, %s1770_s26 }
 0x299   : > { %1126 = vrot.lane.b32.xlu1 %v1930_v17, %s1770_s26 }
 0x2a1   : > { %v863_v6 = vpop.xlane.xlu0 %862 }
 0x2a2   : > { %v746_v7 = vpop.xlane.xlu1 %745  ;;  %1726 = vrcp.f32 %v863_v6 }
 0x2a3   : > { %1728 = vrcp.f32 %v746_v7 }
 0x2a8   : > { %v1727_v8 = vpop.eup %1726 }
 0x2a9   : > { %v1729_v9 = vpop.eup %1728  ;;  %v869_v10 = vmul.f32 %v1727_v8, %v1977_v27 }
 0x2aa   : > { %v752_v11 = vmul.f32 %v1729_v9, %v1979_v28 }
 0x2ab   : > { %v871_v13 = vpack.c.bf16 %v869_v10, %v869_v10 }
 0x2ac   : > { %v754_v14 = vpack.c.bf16 %v752_v11, %v752_v11 }
 0x2ad   : > { %1603 = vmatmul.msk.bf16.vlgmr.msrb.gmra.mxu2 %vm684_vm2, %v871_v13 }
 0x2ae   : > { %1599 = vmatmul.msk.bf16.vlgmr.msra.gmra.mxu3 %vm684_vm2, %v754_v14 }
 0x2af   : > { %909 = vmatpush.bf16.msra.mxu3 %v900_v15 }
 0x2b0   : > { %v749_v12 = vpop.xlane.xlu0 %748 }
 0x2b1   : > { %1730 = vrcp.f32 %v749_v12 }
 0x2b2   : > { %v866_v17 = vpop.xlane.xlu2 %865 }
 0x2b3   : > { %1732 = vrcp.f32 %v866_v17 }
 0x2b7   : > { %v1731_v16 = vpop.eup %1730 }
 0x2b8   : > { %v753_v18 = vmul.f32 %v1731_v16, %v1986_v40 }
 0x2b9   : > { %v1733_v24 = vpop.eup %1732 }
 0x2ba   : > { %v990_v19 = vpop.permute.xlu2 %989  ;;  %v1011_v21 = vpop.permute.xlu1 %1010  ;;  %v755_v22 = vpack.c.bf16 %v753_v18, %v753_v18  ;;  %v870_v25 = vmul.f32 %v1733_v24, %v1991_v43 }
 0x2bb   : > { %v995_v20 = vsel %vm761_vm3, %v990_v19, 0  ;;  %v1016_v23 = vsel %vm761_vm3, %v1011_v21, 0 }
 0x2bc   : > { %1004 = vmatpush.bf16.msra.mxu2 %v995_v20  ;;  %v872_v26 = vpack.c.bf16 %v870_v25, %v870_v25 }
 0x2be   : > { %1600 = vmatmul.msk.bf16.vlgmr.msrb.gmra.mxu3 %vm684_vm2, %v755_v22  ;;  %v1703_v22 = vld [vmem:[%s2136_s27] ss:$0 sm:$0xff] }
 0x2bf   : > { %1025 = vmatpush.bf16.msrb.mxu3 %v1016_v23 }
 0x2ce   : > { %1604 = vmatmul.msk.bf16.vlgmr.msra.gmra.mxu3 %vm684_vm2, %v872_v26 }
 0x2ee   : > { %v982_v27 = vpop.xlane.xlu0 %981 }
 0x2ef   : > { %1734 = vrcp.f32 %v982_v27 }
 0x2f3   : > { %v979_v28 = vpop.xlane.xlu1 %978  ;;  %v1098_v34 = vpop.xlane.xlu2 %1097 }
 0x2f4   : > { %1736 = vrcp.f32 %v979_v28 }
 0x2f5   : > { %v1735_v29 = vpop.eup %1734  ;;  %1738 = vrcp.f32 %v1098_v34 }
 0x2f6   : > { %v986_v30 = vmul.f32 %v1735_v29, %v1719_v59  ;;  %v1095_v36 = vpop.xlane.xlu0 %1094 }
 0x2f7   : > { %1740 = vrcp.f32 %v1095_v36 }
 0x2f8   : > { %v988_v31 = vpack.c.bf16 %v986_v30, %v986_v30 }
 0x2fa   : > { %1608 = vmatmul.msk.bf16.vlgmr.msrb.gmra.mxu3 %vm684_vm2, %v988_v31  ;;  %v1737_v32 = vpop.eup %1736  ;;  %v1774_v31 = vmov 32.0  }
 0x2fb   : > { %v985_v33 = vmul.f32 %v1737_v32, %v1723_v0  ;;  %v1739_v37 = vpop.eup %1738  ;;  %1742 = vrcp.f32 %v1774_v31 }
 0x2fc   : > { %v1102_v40 = vmul.f32 %v1739_v37, %v2000_v63 }
 0x2fd   : > { %v987_v35 = vpack.c.bf16 %v985_v33, %v985_v33  ;;  %v1741_v38 = vpop.eup %1740 }
 0x2fe   : > { %v1101_v41 = vmul.f32 %v1741_v38, %v1725_v60  ;;  %v1104_v45 = vpack.c.bf16 %v1102_v40, %v1102_v40  ;;  %v1657_v60 = vld [vmem:[%s1871_s25 + $0x8] sm:$0xff] }
 0x2ff   : > { %1607 = vmatmul.msk.bf16.vlgmr.msra.gmra.mxu2 %vm684_vm2, %v987_v35  ;;  %1209 = vmatpush.bf16.msra.mxu0 %v1657_v60  ;;  %v1704_v60 = vld [vmem:[%s2137_s29] ss:$0 sm:$0xff] }
 0x300   : > { %v1103_v46 = vpack.c.bf16 %v1101_v41, %v1101_v41 }
 0x301   : > { %v1743_v32 = vpop.eup %1742 }
 0x302   : > { %v1228_v33 = vmul.f32 32.0, %v1743_v32  ;;  %vm1232_vm6 = vweird.f32 %v1743_v32 }
 0x303   : > { %1210 = vmatpush.bf16.msra.mxu0 %v1656_v3 }
 0x304   : > { %v1229_v34 = vsub.f32 1.0, %v1228_v33 }
 0x306   : > { %v1230_v35 = vmul.f32 %v1743_v32, %v1229_v34 }
 0x308   : > { %v1231_v36 = vadd.f32 %v1743_v32, %v1230_v35 }
 0x309   : > { %v1106_v39 = vpop.permute.xlu0 %1105 }
 0x30a   : > { %v1111_v42 = vsel %vm761_vm3, %v1106_v39, 0 }
 0x30b   : > { %v1127_v43 = vpop.permute.xlu1 %1126  ;;  %1120 = vmatpush.bf16.msrb.mxu2 %v1111_v42 }
 0x30c   : > { %v1132_v44 = vsel %vm761_vm3, %v1127_v43, 0 }
 0x30d   : > { %1141 = vmatpush.bf16.msra.mxu3 %v1132_v44 }
 0x30f   : > { %1611 = vmatmul.msk.bf16.vlgmr.msrb.gmra.mxu2 %vm684_vm2, %v1103_v46  ;;  %v1659_v46 = vld [vmem:[%s1888_s21 + $0x8] sm:$0xff] }
 0x310   : > { %1612 = vmatmul.msk.bf16.vlgmr.msra.gmra.mxu3 %vm684_vm2, %v1104_v45  ;;  %1312 = vmatpush.bf16.msra.mxu1 %v1659_v46 }
 0x330   : > { %v890_v47 = vpop.f32.mrf.mxu2 }
 0x331   : > { %v774_v48 = vpop.f32.mrf.mxu3 }
 0x338   : > { %v892_v49 = vpop.f32.mrf.mxu2 }
 0x339   : > { %v776_v50 = vpop.f32.mrf.mxu3 }
 0x33a   : > { %v1658_v50 = vld [vmem:[%s1888_s21] sm:$0xff] }
 0x33b   : > { %1313 = vmatpush.bf16.msra.mxu1 %v1658_v50 }
 0x341   : > { %v795_v51 = vpop.f32.mrf.mxu3 }
 0x349   : > { %v797_v52 = vpop.f32.mrf.mxu3 }
 0x351   : > { %v911_v53 = vpop.f32.mrf.mxu3 }
 0x352   : > { %v1687_v54 = vpack.i.bf16 %v911_v53, %v890_v47 }
 0x354   : > { %1688 = vrot.lane.b32.xlu0 %v1687_v54, %s1771_s30 }
 0x359   : > { %v913_v55 = vpop.f32.mrf.mxu3 }
 0x37d   : > { %v1027_v56 = vpop.f32.mrf.mxu3 }
 0x382   : > { %v1006_v57 = vpop.f32.mrf.mxu2 }
 0x383   : > { %v1692_v58 = vpack.i.bf16 %v1027_v56, %v1006_v57 }
 0x385   : > { %v1029_v59 = vpop.f32.mrf.mxu3  ;;  %1693 = vrot.lane.b32.xlu1 %v1692_v58, %s1772_s22 }
 0x38a   : > { %v1008_v61 = vpop.f32.mrf.mxu2 }
 0x392   : > { %v1122_v62 = vpop.f32.mrf.mxu2 }
 0x393   : > { %v1143_v63 = vpop.f32.mrf.mxu3 }
 0x394   : > { %v1697_v0 = vpack.i.bf16 %v1143_v63, %v1122_v62 }
 0x396   : > { %1698 = vrot.lane.b32.xlu0 %v1697_v0, %s1773_s18 }
 0x39a   : > { %v1124_v1 = vpop.f32.mrf.mxu2 }
 0x39b   : > { %v1145_v2 = vpop.f32.mrf.mxu3 }
 0x3c6   : > { %v1689_v6 = vpop.permute.xlu0 %1688 }
 0x3c7   : > { %v1691_v8 = vunpack.i.h.bf16 %v1689_v6  ;;  %v1690_v9 = vunpack.i.l.bf16 %v1689_v6 }
 0x3c9   : > { %v1172_v14 = vsel %vm684_vm2, %v795_v51, %v1691_v8  ;;  %v1171_v15 = vsel %vm684_vm2, %v774_v48, %v1690_v9  ;;  %v1705_v8 = vld [vmem:[%s2138_s20] ss:$0 sm:$0xff] }
 0x3f7   : > { %v1694_v7 = vpop.permute.xlu1 %1693 }
 0x3f8   : > { %v1696_v10 = vunpack.i.h.bf16 %v1694_v7  ;;  %v1695_v11 = vunpack.i.l.bf16 %v1694_v7 }
 0x3fa   : > { %v1174_v16 = vsel %vm1173_vm4, %v1171_v15, %v1695_v11  ;;  %v1175_v18 = vsel %vm1173_vm4, %v1172_v14, %v1696_v10 }
 0x408   : > { %v1699_v13 = vpop.permute.xlu0 %1698 }
 0x409   : > { %v1701_v12 = vunpack.i.h.bf16 %v1699_v13  ;;  %v1700_v17 = vunpack.i.l.bf16 %v1699_v13 }
 0x40b   : > { %v1177_v19 = vsel %vm1176_vm5, %v1174_v16, %v1700_v17  ;;  %v1178_v20 = vsel %vm1176_vm5, %v1175_v18, %v1701_v12  ;;  %v1663_v12 = vld [vmem:[%s1898_s28 + $0x18] sm:$0xff]  ;;  %v1662_v17 = vld [vmem:[%s1898_s28 + $0x10] sm:$0xff]  ;;  %v1661_v16 = vld [vmem:[%s1898_s28 + $0x8] sm:$0xff] }
 0x40c   : > { %v1179_v21 = vpack.c.bf16 %v1178_v20, %v1177_v19  ;;  %1367 = vmatpush.bf16.msra.mxu2 %v1663_v12  ;;  %v1660_v18 = vld [vmem:[%s1898_s28] sm:$0xff] }
 0x40d   : > { %v1706_v20 = vld [vmem:[%s2139_s4] ss:$0 sm:$0xff] }
 0x40e   : > { %1621 = vmatmul.msk.bf16.vlgmr.msra.gmra.mxu0 %vm658_vm1, %v1179_v21 }
 0x410   : > { %1368 = vmatpush.bf16.msra.mxu2 %v1662_v17 }
 0x414   : > { %1369 = vmatpush.bf16.msra.mxu2 %v1661_v16 }
 0x418   : > { %1370 = vmatpush.bf16.msra.mxu2 %v1660_v18 }
 0x48b   : > { %v1212_v23 = vpop.f32.mrf.mxu0 }
 0x48c   : > { %v1213_v24 = vadd.f32 %v1703_v22, %v1212_v23 }
 0x48e   : > { %v1217_v25 = vadd.f32 %v1213_v24, %v1918_v4  ;;  %v2040_v4 = vsel %vm1232_vm6, %v1743_v32, %v1231_v36 }
 0x490   : > { %v1221_v26 = vsel %vm658_vm1, %v1217_v25, 0.0 }
 0x491   : > { %1222 = vadd.xlane.f32.xlu1 %v1221_v26 }
 0x493   : > { %v1214_v27 = vpop.f32.mrf.mxu0 }
 0x494   : > { %v1215_v28 = vadd.f32 %v1703_v22, %v1214_v27  ;;  %v1707_v27 = vld [vmem:[%s618_s0] ss:$0 sm:$0xff] }
 0x496   : > { %v1218_v29 = vadd.f32 %v1215_v28, %v1920_v5 }
 0x498   : > { %v1224_v30 = vsel %vm658_vm1, %v1218_v29, 0.0 }
 0x499   : > { %1225 = vadd.xlane.f32.xlu2 %v1224_v30 }
 0x504   : > { %v1223_v37 = vpop.xlane.xlu1 %1222 }
 0x505   : > { %v1234_v38 = vmul.f32 %v2040_v4, %v1223_v37 }
 0x507   : > { %v1236_v39 = vsub.f32 %v1217_v25, %v1234_v38 }
 0x509   : > { %v1238_v5 = vmul.f32 %v1236_v39, %v1236_v39 }
 0x50b   : > { %v1240_v40 = vsel %vm658_vm1, %v1238_v5, 0.0 }
 0x50c   : > { %v1226_v41 = vpop.xlane.xlu2 %1225  ;;  %1241 = vadd.xlane.f32.xlu0 %v1240_v40 }
 0x50d   : > { %v1235_v42 = vmul.f32 %v2040_v4, %v1226_v41 }
 0x50f   : > { %v1237_v43 = vsub.f32 %v1218_v29, %v1235_v42 }
 0x511   : > { %v1239_v44 = vmul.f32 %v1237_v43, %v1237_v43 }
 0x513   : > { %v1243_v45 = vsel %vm658_vm1, %v1239_v44, 0.0 }
 0x514   : > { %1244 = vadd.xlane.f32.xlu2 %v1243_v45 }
 0x57f   : > { %v1242_v47 = vpop.xlane.xlu0 %1241 }
 0x580   : > { %v1246_v48 = vmul.f32 %v1242_v47, %v2040_v4 }
 0x582   : > { %v1248_v49 = vadd.f32 1e-05, %v1246_v48 }
 0x584   : > { %1744 = vrsqrt.f32 %v1248_v49  ;;  %vm1256_vm8 = vweird.f32 %v1248_v49 }
 0x587   : > { %v1245_v51 = vpop.xlane.xlu2 %1244 }
 0x588   : > { %v1247_v52 = vmul.f32 %v1245_v51, %v2040_v4 }
 0x58a   : > { %v1745_v53 = vpop.eup %1744  ;;  %v1249_v54 = vadd.f32 1e-05, %v1247_v52 }
 0x58b   : > { %v1251_v55 = vmul.f32 %v1745_v53, %v1248_v49  ;;  %vm1257_vm7 = vweird.f32 %v1745_v53 }
 0x58c   : > { %1746 = vrsqrt.f32 %v1249_v54  ;;  %vm1258_vm9 = vmor %vm1256_vm8, %vm1257_vm7  ;;  %vm1266_vm11 = vweird.f32 %v1249_v54 }
 0x58d   : > { %v1252_v56 = vmul.f32 %v1745_v53, %v1251_v55 }
 0x58f   : > { %v1253_v57 = vmul.f32 0.5, %v1252_v56 }
 0x591   : > { %v1254_v58 = vsub.f32 1.5, %v1253_v57 }
 0x592   : > { %v1747_v59 = vpop.eup %1746 }
 0x593   : > { %v1255_v61 = vmul.f32 %v1745_v53, %v1254_v58  ;;  %v1261_v62 = vmul.f32 %v1747_v59, %v1249_v54  ;;  %vm1267_vm10 = vweird.f32 %v1747_v59 }
 0x594   : > { %vm1268_vm12 = vmor %vm1266_vm11, %vm1267_vm10 }
 0x595   : > { %v1262_v63 = vmul.f32 %v1747_v59, %v1261_v62  ;;  %v1259_v0 = vsel %vm1258_vm9, %v1745_v53, %v1255_v61  ;;  %v1709_v62 = vld [vmem:[%s624_s1] ss:$0 sm:$0xff] }
 0x596   : > { %v1270_v3 = vmul.f32 %v1259_v0, %v1236_v39 }
 0x597   : > { %v1263_v1 = vmul.f32 0.5, %v1262_v63 }
 0x598   : > { %v1275_v9 = vmul.f32 %v1704_v60, %v1270_v3 }
 0x599   : > { %v1264_v2 = vsub.f32 1.5, %v1263_v1 }
 0x59a   : > { %v1280_v13 = vadd.f32 %v1705_v8, %v1275_v9 }
 0x59b   : > { %v1265_v6 = vmul.f32 %v1747_v59, %v1264_v2 }
 0x59d   : > { %v1269_v7 = vsel %vm1268_vm12, %v1747_v59, %v1265_v6  ;;  %v1708_v59 = vld [vmem:[%s621_s3] ss:$0 sm:$0xff] }
 0x59e   : > { %v1271_v10 = vmul.f32 %v1269_v7, %v1237_v43 }
 0x5a0   : > { %v1276_v11 = vmul.f32 %v1704_v60, %v1271_v10 }
 0x5a2   : > { %v1281_v14 = vadd.f32 %v1705_v8, %v1276_v11 }
 0x5a4   : > { %v1282_v15 = vpack.c.bf16 %v1281_v14, %v1280_v13 }
 0x5a6   : > { %1630 = vmatmul.msk.bf16.vlgmr.msra.gmra.mxu1 %vm658_vm1, %v1282_v15 }
 0x623   : > { %v1315_v19 = vpop.f32.mrf.mxu1 }
 0x624   : > { %v1316_v21 = vadd.f32 %v1706_v20, %v1315_v19 }
 0x626   : > { %v1320_v24 = vmax.f32 %v1316_v21, 0.0 }
 0x62b   : > { %v1317_v22 = vpop.f32.mrf.mxu1 }
 0x62c   : > { %v1318_v23 = vadd.f32 %v1706_v20, %v1317_v22 }
 0x62e   : > { %v1321_v25 = vmax.f32 %v1318_v23, 0.0 }
 0x630   : > { %v1322_v26 = vpack.c.bf16 %v1321_v25, %v1320_v24 }
 0x632   : > { %1647 = vmatmul.msk.bf16.vlgmr.msra.gmra.mxu2 %vm1359_vm13, %v1322_v26 }
 0x6b5   : > { %v1372_v28 = vpop.f32.mrf.mxu2 }
 0x6b6   : > { %v1373_v29 = vadd.f32 %v1707_v27, %v1372_v28 }
 0x6b8   : > { %v1377_v30 = vadd.f32 %v1373_v29, %v1280_v13 }
 0x6ba   : > { %v1381_v31 = vsel %vm658_vm1, %v1377_v30, 0.0 }
 0x6bb   : > { %1382 = vadd.xlane.f32.xlu2 %v1381_v31 }
 0x6bd   : > { %v1374_v32 = vpop.f32.mrf.mxu2 }
 0x6be   : > { %v1375_v33 = vadd.f32 %v1707_v27, %v1374_v32 }
 0x6c0   : > { %v1378_v34 = vadd.f32 %v1375_v33, %v1281_v14 }
 0x6c2   : > { %v1384_v35 = vsel %vm658_vm1, %v1378_v34, 0.0 }
 0x6c3   : > { %1385 = vadd.xlane.f32.xlu2 %v1384_v35 }
 0x72e   : > { %v1383_v36 = vpop.xlane.xlu2 %1382 }
 0x72f   : > { %v1387_v37 = vmul.f32 %v1383_v36, %v2040_v4 }
 0x731   : > { %v1389_v38 = vsub.f32 %v1377_v30, %v1387_v37 }
 0x733   : > { %v1391_v39 = vmul.f32 %v1389_v38, %v1389_v38 }
 0x735   : > { %v1393_v5 = vsel %vm658_vm1, %v1391_v39, 0.0 }
 0x736   : > { %1394 = vadd.xlane.f32.xlu2 %v1393_v5  ;;  %v1386_v40 = vpop.xlane.xlu2 %1385 }
 0x737   : > { %v1388_v41 = vmul.f32 %v1386_v40, %v2040_v4 }
 0x739   : > { %v1390_v42 = vsub.f32 %v1378_v34, %v1388_v41 }
 0x73b   : > { %v1392_v43 = vmul.f32 %v1390_v42, %v1390_v42 }
 0x73d   : > { %v1396_v44 = vsel %vm658_vm1, %v1392_v43, 0.0 }
 0x73e   : > { %1397 = vadd.xlane.f32.xlu1 %v1396_v44 }
 0x7a9   : > { %v1395_v45 = vpop.xlane.xlu2 %1394 }
 0x7aa   : > { %v1399_v46 = vmul.f32 %v1395_v45, %v2040_v4 }
 0x7ac   : > { %v1401_v47 = vadd.f32 1e-05, %v1399_v46 }
 0x7ae   : > { %1748 = vrsqrt.f32 %v1401_v47  ;;  %vm1409_vm15 = vweird.f32 %v1401_v47 }
 0x7b1   : > { %v1398_v48 = vpop.xlane.xlu1 %1397 }
 0x7b2   : > { %v1400_v49 = vmul.f32 %v1398_v48, %v2040_v4 }
 0x7b4   : > { %v1749_v50 = vpop.eup %1748  ;;  %v1402_v51 = vadd.f32 1e-05, %v1400_v49 }
 0x7b5   : > { %v1404_v52 = vmul.f32 %v1749_v50, %v1401_v47  ;;  %vm1410_vm14 = vweird.f32 %v1749_v50 }
 0x7b6   : > { %1750 = vrsqrt.f32 %v1402_v51  ;;  %vm1411_vm0 = vmor %vm1409_vm15, %vm1410_vm14  ;;  %vm1419_vm3 = vweird.f32 %v1402_v51 }
 0x7b7   : > { %v1405_v53 = vmul.f32 %v1749_v50, %v1404_v52 }
 0x7b9   : > { %v1406_v54 = vmul.f32 0.5, %v1405_v53 }
 0x7bb   : > { %v1407_v55 = vsub.f32 1.5, %v1406_v54 }
 0x7bc   : > { %v1751_v56 = vpop.eup %1750 }
 0x7bd   : > { %v1408_v57 = vmul.f32 %v1749_v50, %v1407_v55  ;;  %v1414_v58 = vmul.f32 %v1751_v56, %v1402_v51  ;;  %vm1420_vm2 = vweird.f32 %v1751_v56 }
 0x7be   : > { %vm1421_vm4 = vmor %vm1419_vm3, %vm1420_vm2 }
 0x7bf   : > { %v1412_v4 = vsel %vm1411_vm0, %v1749_v50, %v1408_v57  ;;  %v1415_v61 = vmul.f32 %v1751_v56, %v1414_v58 }
 0x7c0   : > { %v1423_v63 = vmul.f32 %v1412_v4, %v1389_v38 }
 0x7c1   : > { %v1416_v0 = vmul.f32 0.5, %v1415_v61 }
 0x7c2   : > { %v1428_v1 = vmul.f32 %v1708_v59, %v1423_v63 }
 0x7c3   : > { %v1417_v2 = vsub.f32 1.5, %v1416_v0 }
 0x7c4   : > { %v1433_v60 = vadd.f32 %v1709_v62, %v1428_v1 }
 0x7c5   : > { %v1418_v3 = vmul.f32 %v1751_v56, %v1417_v2 }
 0x7c6   : > { %1435 = vst.msk [vmem:[#allocation2] sm:$0xff] %vm658_vm1, %v1433_v60 }
 0x7c7   : > { %1437 = vst.msk [vmem:[%s2140_s19] sm:$0xff] %vm658_vm1, %v1433_v60  ;;  %v1422_v6 = vsel %vm1421_vm4, %v1751_v56, %v1418_v3 }
 0x7c8   : > { %v1424_v7 = vmul.f32 %v1422_v6, %v1390_v42 }
 0x7ca   : > { %v1429_v8 = vmul.f32 %v1708_v59, %v1424_v7 }
 0x7cc   : > { %v1434_v9 = vadd.f32 %v1709_v62, %v1429_v8 }
 0x7ce   : > { %1436 = vst.msk [vmem:[#allocation2 + $0x8] sm:$0xff] %vm658_vm1, %v1434_v9 }
 0x7cf   : > { %1438 = vst.msk [vmem:[%s2140_s19 + $0x8] sm:$0xff] %vm658_vm1, %v1434_v9 }
 0x7d0 PF: > { %s2141_s27 = sld [smem:[#allocation3_spill]] }
 0x7d6   : > { %s24_s29 = sadd.s32 1, %s2141_s27  }
 0x7d7   : > { %p21_p5 = scmp.ge.s32.totalorder %s24_s29, 4  }
 0x7d9   :  { %23 = sbr.rel (!%p21_p5) target bundleno = 7 (0x7), region = 139 }

</bundles_post_ra>
